<compile_context>
chip_gen: v7x
topology: tpu7x:2x2x1
jax: 0.10.0
libtpu: 0.0.40
codegen_flags: <defaults>
</compile_context>

<pallas_src>
import functools

import jax
import jax.numpy as jnp
from jax.experimental import pallas as pl
from jax.experimental.pallas import tpu as pltpu


# Max rows per batch block (multiple of 8 sublanes).  Actual block is
# min(this, ceil(nrows/2) rounded up to 8) so the grid has >=2 blocks when the
# batch allows it (v7x megacore).  Per-block VMEM stays in the low-MB range.
TEMPLATE_BATCH_BLOCK_MAX = 256
ATTENTION_BATCH_BLOCK_MAX = 128


def _round_up(x, m):
    return ((x + m - 1) // m) * m


def _pick_batch_block(nrows, max_block):
    """Sublane-aligned block; >=2 grid blocks whenever nrows >= 16."""
    half = -(-nrows // 2)                    # ceil(nrows / 2)
    return max(8, min(max_block, _round_up(half, 8)))


# ----------------------------------------------------------------------------
# Pallas kernels
# ----------------------------------------------------------------------------
def _bilstm_attn_kernel(x_ref, wih_ref, wblk_ref, b_ref, v_ref,
                        len_ref, rmask_ref, out_ref, xp, hid_all):
    """Fused bidirectional LSTM + masked attention for one batch block.

    x_ref    : (L, B, E)   bf16 time-major embedded template tokens
    wih_ref  : (E, 8H)     bf16 input weights, gate-type-major columns
                           [i | f | g | o], each 2H = [fwd H | bwd H]
    wblk_ref : (2H, 8H)    bf16 block-diagonal recurrent weights (rows = [h_f|h_b])
    b_ref    : (1, 8H)     f32 combined biases (b_ih + b_hh), same column layout
    v_ref    : (1, 2H)     f32 attention vector
    len_ref  : (B, 1)      int32 valid template lengths
    rmask_ref: (B, 1)      f32 1.0 for real rows, 0.0 for batch-padding rows
    out_ref  : (B, 2H)     f32 sentence representations
    xp       : (L, B, 8H)  f32 scratch: hoisted gate pre-activations; backward
                           lanes are stored time-reversed so each serial step
                           reads one contiguous (B, 128) row.
    hid_all  : (L, B, 2H)  f32 scratch: combined [fwd|bwd] hidden states.
    """
    seq_len, bsz, _ = x_ref.shape
    hid2, g8 = wblk_ref.shape          # 2H, 8H
    hid = hid2 // 2

    # ---- hoisted input projection: ONE lane-dense (L*B, E) x (E, 8H) matmul.
    x_flat = x_ref[...].reshape(seq_len * bsz, x_ref.shape[2])      # bf16
    proj = jnp.dot(x_flat, wih_ref[...], preferred_element_type=jnp.float32)
    proj = (proj + b_ref[...]).reshape(seq_len, bsz, g8)            # f32

    # Backward-direction lanes get the time-REVERSED projection so the serial
    # loop only ever reads xp[t] (single full-width row).  One-time pre-pass.
    is_fwd = (jax.lax.broadcasted_iota(jnp.int32, (bsz, g8), 1) % hid2) < hid
    for t in range(seq_len):                       # static, outside recurrence
        xp[t] = jnp.where(is_fwd, proj[t], proj[seq_len - 1 - t])

    wblk = wblk_ref[...]                                            # bf16

    def step(t, carry):
        h, c = carry                                                # (B, 2H) f32
        rt = seq_len - 1 - t
        # single block-diagonal bf16 recurrence matmul -> lane-dense (B, 128)
        gates = xp[t] + jnp.dot(h.astype(jnp.bfloat16), wblk,
                                preferred_element_type=jnp.float32)
        # gate math in f32 (v5e has no bf16 VPU/EUP); i & f share one sigmoid.
        sig_if = jax.nn.sigmoid(gates[:, 0:2 * hid2])
        i_g = sig_if[:, 0:hid2]
        f_g = sig_if[:, hid2:2 * hid2]
        g_g = jnp.tanh(gates[:, 2 * hid2:3 * hid2])
        o_g = jax.nn.sigmoid(gates[:, 3 * hid2:4 * hid2])
        c_new = f_g * c + i_g * g_g
        h_new = o_g * jnp.tanh(c_new)
        # two scratch stores per step (fwd half at t, bwd half at rt)
        hid_all[t, :, :hid] = h_new[:, :hid]
        hid_all[rt, :, hid:] = h_new[:, hid:]
        return h_new, c_new

    # TODO(synk): backward direction runs over the full padded sequence (no
    # pack_padded_sequence emulation), matching the previous accepted port.
    h0 = jnp.zeros((bsz, hid2), jnp.float32)
    c0 = jnp.zeros((bsz, hid2), jnp.float32)
    # Partial unroll keeps LLO visibility without a vreg-pressure cliff when
    # Lt grows; at small Lt this is a full unroll.
    jax.lax.fori_loop(0, seq_len, step, (h0, c0), unroll=min(seq_len, 8))

    # ---- masked attention over VMEM-resident hidden states (never hit HBM)
    h_all = hid_all[...]                                             # (L, B, 2H)
    v = v_ref[...]                                                   # (1, 2H)
    logits = jnp.sum(h_all * v[None, :, :], axis=-1, keepdims=True)  # (L, B, 1)

    rmask = rmask_ref[...][None]                                     # (1, B, 1)
    # Batch-global max (numerical stability only; cancels in the renorm).
    # Artificial padding rows are pushed to -1e30 so they cannot perturb it.
    m = jnp.max(logits * rmask + (rmask - 1.0) * jnp.float32(1e30))
    unnorm = jnp.exp(logits - m)                                     # (L, B, 1)

    t_idx = jax.lax.broadcasted_iota(jnp.int32, (seq_len, bsz, 1), 0)
    tmask = (t_idx < len_ref[...][None]).astype(jnp.float32)         # (L, B, 1)
    masked = unnorm * tmask * rmask
    denom = jnp.sum(masked, axis=0, keepdims=True)                   # (1, B, 1)
    denom = jnp.maximum(denom, jnp.float32(1e-30))                   # len==0 guard
    attn = masked * pl.reciprocal(denom, approx=True)                # EUP divide
    out_ref[...] = jnp.sum(h_all * attn, axis=0)                     # (B, 2H)


def _attention_kernel(h_ref, v_ref, len_ref, out_ref):
    """Masked attention for the input encoder states (one batch block).

    h_ref  : (B, L, H2) float32 hidden states
    v_ref  : (1, H2)    attention vector
    len_ref: (B, 1)     int32 valid lengths
    out_ref: (B, H2)    sentence representations
    """
    h = h_ref[...]                                   # (B, L, H2)
    v = v_ref[...]                                   # (1, H2)
    bsz, seq_len, _ = h.shape

    logits = jnp.sum(h * v[None, :, :], axis=-1)     # (B, L)
    # torch reference uses a *global* max; it cancels in the renormalization,
    # so a per-block max is numerically equivalent.
    unnorm = jnp.exp(logits - jnp.max(logits))       # (B, L)

    idx = jax.lax.broadcasted_iota(jnp.int32, (bsz, seq_len), 1)
    mask = (idx < len_ref[...]).astype(jnp.float32)  # (B, L)

    masked = unnorm * mask
    denom = jnp.sum(masked, axis=1, keepdims=True)   # (B, 1)
    denom = jnp.maximum(denom, jnp.float32(1e-30))   # len==0 / pad-row guard
    attn = masked * pl.reciprocal(denom, approx=True)

    out_ref[...] = jnp.sum(h * attn[:, :, None], axis=1)  # (B, H2)


# ----------------------------------------------------------------------------
# Weight packing helpers (run once in the XLA wrapper, tiny)
# ----------------------------------------------------------------------------
def _interleave_gate_cols(wf, wb, hid):
    """[i_f|i_b|f_f|f_b|g_f|g_b|o_f|o_b] column layout from (.., 4H) fwd/bwd."""
    parts = []
    for g in range(4):
        parts.append(wf[..., g * hid:(g + 1) * hid])
        parts.append(wb[..., g * hid:(g + 1) * hid])
    return jnp.concatenate(parts, axis=-1)


def _block_diag_hh(w_hh_f, w_hh_b, hid):
    """(2H, 8H) block-diagonal recurrent weights matching the gate layout."""
    z = jnp.zeros((hid, hid), w_hh_f.dtype)
    parts = []
    for g in range(4):
        parts.append(jnp.concatenate([w_hh_f[:, g * hid:(g + 1) * hid], z], axis=0))
        parts.append(jnp.concatenate([z, w_hh_b[:, g * hid:(g + 1) * hid]], axis=0))
    return jnp.concatenate(parts, axis=1)


# ----------------------------------------------------------------------------
# Pallas wrappers
# ----------------------------------------------------------------------------
def template_repre(params, templates, tem_lengths):
    """(B, 3, Lt) templates -> (B, 3, 2H) representations via one fused kernel."""
    bsz, n_tmpl, tlen = templates.shape
    emb_tbl = params["embedding"]
    emb_dim = emb_tbl.shape[1]
    hid = params["w_hh_f"].shape[0]
    h2 = 2 * hid
    g8 = 8 * hid

    nrows = bsz * n_tmpl
    bb = _pick_batch_block(nrows, TEMPLATE_BATCH_BLOCK_MAX)
    bpad = _round_up(nrows, bb)
    npad = bpad - nrows

    # Fold the 3 templates into the batch: row r = b*3 + k. Gather embeddings
    # directly in time-major layout; cast to bf16 (halves streamed DMA bytes).
    tok = templates.reshape(nrows, tlen).astype(jnp.int32)
    x = emb_tbl[tok.T].astype(jnp.bfloat16)                         # (Lt, 3B, E)
    lens = jnp.repeat(tem_lengths.astype(jnp.int32), n_tmpl)        # (3B,)
    if npad:
        x = jnp.pad(x, ((0, 0), (0, npad), (0, 0)))
        lens = jnp.pad(lens, (0, npad))
    lens = lens.reshape(bpad, 1)
    rmask = (jnp.arange(bpad, dtype=jnp.int32) < nrows).astype(jnp.float32)
    rmask = rmask.reshape(bpad, 1)

    # Pack weights: lane-dense (E, 8H) input weights, (2H, 8H) block-diagonal
    # recurrent weights, combined bias — all in the gate-type-major layout.
    w_ih = _interleave_gate_cols(params["w_ih_f"], params["w_ih_b"], hid)
    w_ih = w_ih.astype(jnp.bfloat16)
    w_blk = _block_diag_hh(params["w_hh_f"], params["w_hh_b"], hid)
    w_blk = w_blk.astype(jnp.bfloat16)
    bias = _interleave_gate_cols(params["b_f"], params["b_b"], hid).astype(jnp.float32)
    att_v = params["tmpl_att_v"].reshape(1, h2).astype(jnp.float32)

    rep = pl.pallas_call(
        _bilstm_attn_kernel,
        out_shape=jax.ShapeDtypeStruct((bpad, h2), jnp.float32),
        grid_spec=pltpu.PrefetchScalarGridSpec(
            num_scalar_prefetch=0,
            grid=(bpad // bb,),
            in_specs=[
                pl.BlockSpec((tlen, bb, emb_dim), lambda i: (0, i, 0)),  # x (bf16)
                pl.BlockSpec((emb_dim, g8), lambda i: (0, 0)),           # W_ih
                pl.BlockSpec((h2, g8), lambda i: (0, 0)),                # W_hh blkdiag
                pl.BlockSpec((1, g8), lambda i: (0, 0)),                 # bias
                pl.BlockSpec((1, h2), lambda i: (0, 0)),                 # attn vec
                pl.BlockSpec((bb, 1), lambda i: (i, 0)),                 # lengths
                pl.BlockSpec((bb, 1), lambda i: (i, 0)),                 # row mask
            ],
            out_specs=pl.BlockSpec((bb, h2), lambda i: (i, 0)),
            scratch_shapes=[
                pltpu.VMEM((tlen, bb, g8), jnp.float32),   # xp (pre-reversed bwd)
                pltpu.VMEM((tlen, bb, h2), jnp.float32),   # combined hidden states
            ],
        ),
        compiler_params=pltpu.CompilerParams(
            dimension_semantics=("parallel",),   # batch blocks shard across TCs (v7x)
            # Safe on v7x's 64 MiB; raise toward ~96 MiB on v5e/v6e for bigger
            # blocks / longer Lt.  Per-block footprint here is only a few MiB.
            vmem_limit_bytes=48 * 1024 * 1024,
        ),
    )(x, w_ih, w_blk, bias, att_v, lens, rmask)

    return rep[:nrows].reshape(bsz, n_tmpl, h2)


def attention(hiddens, att_vec, lengths):
    """hiddens: (B, L, H2), att_vec: (H2,), lengths: (B,) -> (B, H2)."""
    bsz, seq_len, h2 = hiddens.shape
    bb = _pick_batch_block(bsz, ATTENTION_BATCH_BLOCK_MAX)
    bpad = _round_up(bsz, bb)
    npad = bpad - bsz

    h = hiddens.astype(jnp.float32)
    lens = lengths.astype(jnp.int32)
    if npad:
        h = jnp.pad(h, ((0, npad), (0, 0), (0, 0)))
        lens = jnp.pad(lens, (0, npad))          # pad rows -> mask 0 -> output 0
    lens = lens.reshape(bpad, 1)

    out = pl.pallas_call(
        _attention_kernel,
        out_shape=jax.ShapeDtypeStruct((bpad, h2), jnp.float32),
        grid_spec=pltpu.PrefetchScalarGridSpec(
            num_scalar_prefetch=0,
            grid=(bpad // bb,),
            in_specs=[
                pl.BlockSpec((bb, seq_len, h2), lambda i: (i, 0, 0)),
                pl.BlockSpec((1, h2), lambda i: (0, 0)),
                pl.BlockSpec((bb, 1), lambda i: (i, 0)),
            ],
            out_specs=pl.BlockSpec((bb, h2), lambda i: (i, 0)),
        ),
        compiler_params=pltpu.CompilerParams(
            dimension_semantics=("parallel",),
        ),
    )(h, att_vec.reshape(1, h2).astype(jnp.float32), lens)

    return out[:bsz]


# ----------------------------------------------------------------------------
# SentRepreGenerator forward
# ----------------------------------------------------------------------------
@jax.jit
def sent_repre_generator_fwd(params, templates, tem_lengths, hidden_layers, x_lengths):
    """
    templates     : (B, 3, Lt) int32
    tem_lengths   : (B,)       int32
    hidden_layers : (B, Lx, hidden_size) float32
    x_lengths     : (B,)       int32
    returns (templates_repre (B, 3, hidden_size), input_repre (B, hidden_size))
    """
    templates_repre = template_repre(params, templates, tem_lengths)
    input_repre = attention(hidden_layers, params["input_att_v"], x_lengths)
    # TODO(synk): slot-type regularization (`sr`) path with y_bin mask not needed for tr-mode.
    return templates_repre, input_repre


# ----------------------------------------------------------------------------
# Deterministic parameter init (synthetic, mirrors module __init__ shapes)
# ----------------------------------------------------------------------------
def init_params(key, n_words, emb_dim, hidden_dim):
    ks = jax.random.split(key, 12)
    h4 = 4 * hidden_dim
    emb = 0.1 * jax.random.normal(ks[0], (n_words, emb_dim), jnp.float32)
    emb = emb.at[0].set(0.0)  # padding_idx = 0
    params = {
        "embedding": emb,
        # forward direction LSTM (stored transposed: (in, 4H) / (H, 4H), gate order i,f,g,o)
        "w_ih_f": 0.1 * jax.random.normal(ks[1], (emb_dim, h4), jnp.float32),
        "w_hh_f": 0.1 * jax.random.normal(ks[2], (hidden_dim, h4), jnp.float32),
        "b_f": 0.1 * jax.random.normal(ks[3], (1, h4), jnp.float32),
        # backward direction LSTM
        "w_ih_b": 0.1 * jax.random.normal(ks[4], (emb_dim, h4), jnp.float32),
        "w_hh_b": 0.1 * jax.random.normal(ks[5], (hidden_dim, h4), jnp.float32),
        "b_b": 0.1 * jax.random.normal(ks[6], (1, h4), jnp.float32),
        # attention vectors (torch init: normal std=0.05), size = hidden_size = 2*hidden_dim
        "tmpl_att_v": 0.05 * jax.random.normal(ks[7], (2 * hidden_dim,), jnp.float32),
        "input_att_v": 0.05 * jax.random.normal(ks[8], (2 * hidden_dim,), jnp.float32),
    }
    return params


if __name__ == "__main__":
    # Small, module-consistent shapes
    bsz = 2
    n_words = 50
    emb_dim = 16
    hidden_dim = 16            # bidirection=True -> hidden_size = 32
    hidden_size = 2 * hidden_dim
    max_template_len = 8
    max_len = 10

    key = jax.random.PRNGKey(0)
    k_par, k_tok, k_hid = jax.random.split(key, 3)

    params = init_params(k_par, n_words, emb_dim, hidden_dim)

    templates = jax.random.randint(k_tok, (bsz, 3, max_template_len), 1, n_words, jnp.int32)
    tem_lengths = jnp.array([max_template_len, 5], dtype=jnp.int32)
    hidden_layers = jax.random.normal(k_hid, (bsz, max_len, hidden_size), jnp.float32)
    x_lengths = jnp.array([max_len, 7], dtype=jnp.int32)

    templates_repre, input_repre = sent_repre_generator_fwd(
        params, templates, tem_lengths, hidden_layers, x_lengths)
    jax.block_until_ready((templates_repre, input_repre))

    assert templates_repre.shape == (bsz, 3, hidden_size)
    assert input_repre.shape == (bsz, hidden_size)
    assert bool(jnp.all(jnp.isfinite(templates_repre)))
    assert bool(jnp.all(jnp.isfinite(input_repre)))
    print("KERNEL_OK")
</pallas_src>

<mosaic_0001>
module attributes {stable_mosaic.version = 11 : i64} {
  func.func @_attention_kernel(%arg0: i32, %arg1: memref<8x10x32xf32, #tpu.memory_space<vmem>>, %arg2: memref<1x32xf32, #tpu.memory_space<vmem>>, %arg3: memref<8x1xi32, #tpu.memory_space<vmem>>, %arg4: memref<8x32xf32, #tpu.memory_space<vmem>>) attributes {dimension_semantics = [#tpu.dimension_semantics<parallel>], iteration_bounds = array<i64: 1>, scalar_prefetch = 0 : i64, scratch_operands = 0 : i64, tpu.core_type = #tpu.core_type<tc>, window_params = [{transform_indices = @transform_0, window_bounds = array<i64: 8, 10, 32>}, {pipeline_mode = #tpu.pipeline_mode<synchronous>, transform_indices = @transform_1, window_bounds = array<i64: 1, 32>}, {transform_indices = @transform_2, window_bounds = array<i64: 8, 1>}, {transform_indices = @transform_3, window_bounds = array<i64: 8, 32>}]} {
    %c0 = arith.constant 0 : index
    %c0_0 = arith.constant 0 : index
    %c0_1 = arith.constant 0 : index
    %0 = vector.load %arg1[%c0, %c0_0, %c0_1] : memref<8x10x32xf32, #tpu.memory_space<vmem>>, vector<8x10x32xf32>
    %c0_2 = arith.constant 0 : index
    %c0_3 = arith.constant 0 : index
    %1 = vector.load %arg2[%c0_2, %c0_3] : memref<1x32xf32, #tpu.memory_space<vmem>>, vector<1x32xf32>
    %2 = vector.shape_cast %1 : vector<1x32xf32> to vector<1x1x32xf32>
    %3 = vector.broadcast %2 : vector<1x1x32xf32> to vector<8x10x32xf32>
    %4 = arith.mulf %0, %3 : vector<8x10x32xf32>
    %cst = arith.constant dense<0.000000e+00> : vector<8x10xf32>
    %5 = vector.multi_reduction <add>, %4, %cst [2] : vector<8x10x32xf32> to vector<8x10xf32>
    %6 = vector.shape_cast %5 : vector<8x10xf32> to vector<1x8x10xf32>
    %cst_4 = arith.constant dense<0xFF800000> : vector<1xf32>
    %7 = vector.multi_reduction <maximumf>, %6, %cst_4 [1, 2] : vector<1x8x10xf32> to vector<1xf32>
    %8 = vector.shape_cast %7 : vector<1xf32> to vector<1x1x1xf32>
    %9 = vector.extract %8[0, 0, 0] : f32 from vector<1x1x1xf32>
    %10 = vector.broadcast %9 : f32 to vector<8x10xf32>
    %11 = arith.subf %5, %10 : vector<8x10xf32>
    %12 = math.exp %11 : vector<8x10xf32>
    %13 = tpu.iota {dimensions = array<i32: 1>} : vector<8x10xi32>
    %c0_5 = arith.constant 0 : index
    %c0_6 = arith.constant 0 : index
    %14 = vector.load %arg3[%c0_5, %c0_6] : memref<8x1xi32, #tpu.memory_space<vmem>>, vector<8x1xi32>
    %15 = vector.broadcast %14 : vector<8x1xi32> to vector<8x10xi32>
    %16 = arith.cmpi slt, %13, %15 : vector<8x10xi32>
    %17 = arith.extui %16 : vector<8x10xi1> to vector<8x10xi32>
    %18 = arith.sitofp %17 : vector<8x10xi32> to vector<8x10xf32>
    %19 = arith.mulf %12, %18 : vector<8x10xf32>
    %cst_7 = arith.constant dense<0.000000e+00> : vector<8xf32>
    %20 = vector.multi_reduction <add>, %19, %cst_7 [1] : vector<8x10xf32> to vector<8xf32>
    %21 = vector.shape_cast %20 : vector<8xf32> to vector<8x1xf32>
    %cst_8 = arith.constant 1.000000e-30 : f32
    %22 = vector.broadcast %cst_8 : f32 to vector<8x1xf32>
    %23 = arith.maximumf %21, %22 : vector<8x1xf32>
    %24 = tpu.reciprocal %23 {approx = true} : vector<8x1xf32> -> vector<8x1xf32>
    %25 = vector.broadcast %24 : vector<8x1xf32> to vector<8x10xf32>
    %26 = arith.mulf %19, %25 : vector<8x10xf32>
    %27 = vector.shape_cast %26 : vector<8x10xf32> to vector<8x10x1xf32>
    %28 = vector.broadcast %27 : vector<8x10x1xf32> to vector<8x10x32xf32>
    %29 = arith.mulf %0, %28 : vector<8x10x32xf32>
    %cst_9 = arith.constant dense<0.000000e+00> : vector<8x32xf32>
    %30 = vector.multi_reduction <add>, %29, %cst_9 [1] : vector<8x10x32xf32> to vector<8x32xf32>
    %c0_10 = arith.constant 0 : index
    %c0_11 = arith.constant 0 : index
    %31 = vector.load %arg4[%c0_10, %c0_11] : memref<8x32xf32, #tpu.memory_space<vmem>>, vector<8x32xf32>
    tpu.vector_store %arg4[%c0_10, %c0_11], %30 {strides = array<i32>} : memref<8x32xf32, #tpu.memory_space<vmem>>, vector<8x32xf32>,
    return
  }
  func.func @transform_0(%arg0: i32) -> (i32, i32, i32) {
    %c0_i32 = arith.constant 0 : i32
    %c0_i32_0 = arith.constant 0 : i32
    %c0_i32_1 = arith.constant 0 : i32
    return %arg0, %c0_i32, %c0_i32_0 : i32, i32, i32
  }
  func.func @transform_1(%arg0: i32) -> (i32, i32) {
    %c0_i32 = arith.constant 0 : i32
    %c0_i32_0 = arith.constant 0 : i32
    %c0_i32_1 = arith.constant 0 : i32
    return %c0_i32, %c0_i32_0 : i32, i32
  }
  func.func @transform_2(%arg0: i32) -> (i32, i32) {
    %c0_i32 = arith.constant 0 : i32
    %c0_i32_0 = arith.constant 0 : i32
    return %arg0, %c0_i32 : i32, i32
  }
  func.func @transform_3(%arg0: i32) -> (i32, i32) {
    %c0_i32 = arith.constant 0 : i32
    %c0_i32_0 = arith.constant 0 : i32
    return %arg0, %c0_i32 : i32, i32
  }
}

module attributes {stable_mosaic.version = 11 : i64} {
  func.func @_bilstm_attn_kernel(%arg0: i32, %arg1: memref<8x8x16xbf16, #tpu.memory_space<vmem>>, %arg2: memref<16x128xbf16, #tpu.memory_space<vmem>>, %arg3: memref<32x128xbf16, #tpu.memory_space<vmem>>, %arg4: memref<1x128xf32, #tpu.memory_space<vmem>>, %arg5: memref<1x32xf32, #tpu.memory_space<vmem>>, %arg6: memref<8x1xi32, #tpu.memory_space<vmem>>, %arg7: memref<8x1xf32, #tpu.memory_space<vmem>>, %arg8: memref<8x32xf32, #tpu.memory_space<vmem>>, %arg9: memref<8x8x128xf32, #tpu.memory_space<vmem>>, %arg10: memref<8x8x32xf32, #tpu.memory_space<vmem>>) attributes {dimension_semantics = [#tpu.dimension_semantics<parallel>], iteration_bounds = array<i64: 1>, scalar_prefetch = 0 : i64, scratch_operands = 2 : i64, tpu.core_type = #tpu.core_type<tc>, window_params = [{transform_indices = @transform_0, window_bounds = array<i64: 8, 8, 16>}, {pipeline_mode = #tpu.pipeline_mode<synchronous>, transform_indices = @transform_1, window_bounds = array<i64: 16, 128>}, {pipeline_mode = #tpu.pipeline_mode<synchronous>, transform_indices = @transform_2, window_bounds = array<i64: 32, 128>}, {pipeline_mode = #tpu.pipeline_mode<synchronous>, transform_indices = @transform_3, window_bounds = array<i64: 1, 128>}, {pipeline_mode = #tpu.pipeline_mode<synchronous>, transform_indices = @transform_4, window_bounds = array<i64: 1, 32>}, {transform_indices = @transform_5, window_bounds = array<i64: 8, 1>}, {transform_indices = @transform_6, window_bounds = array<i64: 8, 1>}, {transform_indices = @transform_7, window_bounds = array<i64: 8, 32>}]} {
    %c0 = arith.constant 0 : index
    %c0_0 = arith.constant 0 : index
    %c0_1 = arith.constant 0 : index
    %0 = vector.load %arg1[%c0, %c0_0, %c0_1] : memref<8x8x16xbf16, #tpu.memory_space<vmem>>, vector<8x8x16xbf16>
    %1 = vector.shape_cast %0 : vector<8x8x16xbf16> to vector<64x16xbf16>
    %c0_2 = arith.constant 0 : index
    %c0_3 = arith.constant 0 : index
    %2 = vector.load %arg2[%c0_2, %c0_3] : memref<16x128xbf16, #tpu.memory_space<vmem>>, vector<16x128xbf16>
    %cst = arith.constant dense<0.000000e+00> : vector<64x128xf32>
    %3 = tpu.matmul %1, %2, %cst {dimension_numbers = #tpu.dot_dimension_numbers<[1], [0], [0], [1], [0, 0, 1, 1], [], []>} : vector<64x16xbf16>, vector<16x128xbf16>, vector<64x128xf32> -> vector<64x128xf32>
    %c0_4 = arith.constant 0 : index
    %c0_5 = arith.constant 0 : index
    %4 = vector.load %arg4[%c0_4, %c0_5] : memref<1x128xf32, #tpu.memory_space<vmem>>, vector<1x128xf32>
    %5 = vector.broadcast %4 : vector<1x128xf32> to vector<64x128xf32>
    %6 = arith.addf %3, %5 : vector<64x128xf32>
    %7 = vector.shape_cast %6 : vector<64x128xf32> to vector<8x8x128xf32>
    %8 = tpu.iota {dimensions = array<i32: 1>} : vector<8x128xi32>
    %c32_i32 = arith.constant 32 : i32
    %c0_i32 = arith.constant 0 : i32
    %9 = arith.cmpi eq, %c32_i32, %c0_i32 : i32
    %c1_i32 = arith.constant 1 : i32
    %10 = arith.select %9, %c1_i32, %c32_i32 : i32
    %11 = vector.broadcast %10 : i32 to vector<8x128xi32>
    %12 = arith.remsi %8, %11 : vector<8x128xi32>
    %c0_i32_6 = arith.constant 0 : i32
    %13 = vector.broadcast %c0_i32_6 : i32 to vector<8x128xi32>
    %14 = arith.cmpi ne, %12, %13 : vector<8x128xi32>
    %c0_i32_7 = arith.constant 0 : i32
    %15 = vector.broadcast %c0_i32_7 : i32 to vector<8x128xi32>
    %16 = arith.cmpi slt, %12, %15 : vector<8x128xi32>
    %c0_i32_8 = arith.constant 0 : i32
    %17 = arith.cmpi slt, %10, %c0_i32_8 : i32
    %18 = vector.broadcast %17 : i1 to vector<8x128xi1>
    %19 = vector.broadcast %18 : vector<8x128xi1> to vector<8x128xi1>
    %20 = arith.xori %16, %19 : vector<8x128xi1>
    %21 = arith.andi %20, %14 : vector<8x128xi1>
    %22 = vector.broadcast %10 : i32 to vector<8x128xi32>
    %23 = arith.addi %12, %22 : vector<8x128xi32>
    %24 = arith.select %21, %23, %12 : vector<8x128xi1>, vector<8x128xi32>
    %c16_i32 = arith.constant 16 : i32
    %25 = vector.broadcast %c16_i32 : i32 to vector<8x128xi32>
    %26 = arith.cmpi slt, %24, %25 : vector<8x128xi32>
    %27 = vector.extract_strided_slice %7 {offsets = [0, 0, 0], sizes = [1, 8, 128], strides = [1, 1, 1]} : vector<8x8x128xf32> to vector<1x8x128xf32>
    %28 = vector.shape_cast %27 : vector<1x8x128xf32> to vector<8x128xf32>
    %29 = vector.extract_strided_slice %7 {offsets = [7, 0, 0], sizes = [1, 8, 128], strides = [1, 1, 1]} : vector<8x8x128xf32> to vector<1x8x128xf32>
    %30 = vector.shape_cast %29 : vector<1x8x128xf32> to vector<8x128xf32>
    %31 = arith.select %26, %28, %30 : vector<8x128xi1>, vector<8x128xf32>
    %c0_9 = arith.constant 0 : index
    %c0_10 = arith.constant 0 : index
    %c0_11 = arith.constant 0 : index
    %32 = vector.load %arg9[%c0_9, %c0_10, %c0_11] : memref<8x8x128xf32, #tpu.memory_space<vmem>>, vector<1x8x128xf32>
    %33 = vector.shape_cast %32 : vector<1x8x128xf32> to vector<8x128xf32>
    %34 = vector.shape_cast %31 : vector<8x128xf32> to vector<1x8x128xf32>
    tpu.vector_store %arg9[%c0_9, %c0_10, %c0_11], %34 {strides = array<i32>} : memref<8x8x128xf32, #tpu.memory_space<vmem>>, vector<1x8x128xf32>,
    %35 = vector.extract_strided_slice %7 {offsets = [1, 0, 0], sizes = [1, 8, 128], strides = [1, 1, 1]} : vector<8x8x128xf32> to vector<1x8x128xf32>
    %36 = vector.shape_cast %35 : vector<1x8x128xf32> to vector<8x128xf32>
    %37 = vector.extract_strided_slice %7 {offsets = [6, 0, 0], sizes = [1, 8, 128], strides = [1, 1, 1]} : vector<8x8x128xf32> to vector<1x8x128xf32>
    %38 = vector.shape_cast %37 : vector<1x8x128xf32> to vector<8x128xf32>
    %39 = arith.select %26, %36, %38 : vector<8x128xi1>, vector<8x128xf32>
    %c1 = arith.constant 1 : index
    %c0_12 = arith.constant 0 : index
    %c0_13 = arith.constant 0 : index
    %40 = vector.load %arg9[%c1, %c0_12, %c0_13] : memref<8x8x128xf32, #tpu.memory_space<vmem>>, vector<1x8x128xf32>
    %41 = vector.shape_cast %40 : vector<1x8x128xf32> to vector<8x128xf32>
    %42 = vector.shape_cast %39 : vector<8x128xf32> to vector<1x8x128xf32>
    tpu.vector_store %arg9[%c1, %c0_12, %c0_13], %42 {strides = array<i32>} : memref<8x8x128xf32, #tpu.memory_space<vmem>>, vector<1x8x128xf32>,
    %43 = vector.extract_strided_slice %7 {offsets = [2, 0, 0], sizes = [1, 8, 128], strides = [1, 1, 1]} : vector<8x8x128xf32> to vector<1x8x128xf32>
    %44 = vector.shape_cast %43 : vector<1x8x128xf32> to vector<8x128xf32>
    %45 = vector.extract_strided_slice %7 {offsets = [5, 0, 0], sizes = [1, 8, 128], strides = [1, 1, 1]} : vector<8x8x128xf32> to vector<1x8x128xf32>
    %46 = vector.shape_cast %45 : vector<1x8x128xf32> to vector<8x128xf32>
    %47 = arith.select %26, %44, %46 : vector<8x128xi1>, vector<8x128xf32>
    %c2 = arith.constant 2 : index
    %c0_14 = arith.constant 0 : index
    %c0_15 = arith.constant 0 : index
    %48 = vector.load %arg9[%c2, %c0_14, %c0_15] : memref<8x8x128xf32, #tpu.memory_space<vmem>>, vector<1x8x128xf32>
    %49 = vector.shape_cast %48 : vector<1x8x128xf32> to vector<8x128xf32>
    %50 = vector.shape_cast %47 : vector<8x128xf32> to vector<1x8x128xf32>
    tpu.vector_store %arg9[%c2, %c0_14, %c0_15], %50 {strides = array<i32>} : memref<8x8x128xf32, #tpu.memory_space<vmem>>, vector<1x8x128xf32>,
    %51 = vector.extract_strided_slice %7 {offsets = [3, 0, 0], sizes = [1, 8, 128], strides = [1, 1, 1]} : vector<8x8x128xf32> to vector<1x8x128xf32>
    %52 = vector.shape_cast %51 : vector<1x8x128xf32> to vector<8x128xf32>
    %53 = vector.extract_strided_slice %7 {offsets = [4, 0, 0], sizes = [1, 8, 128], strides = [1, 1, 1]} : vector<8x8x128xf32> to vector<1x8x128xf32>
    %54 = vector.shape_cast %53 : vector<1x8x128xf32> to vector<8x128xf32>
    %55 = arith.select %26, %52, %54 : vector<8x128xi1>, vector<8x128xf32>
    %c3 = arith.constant 3 : index
    %c0_16 = arith.constant 0 : index
    %c0_17 = arith.constant 0 : index
    %56 = vector.load %arg9[%c3, %c0_16, %c0_17] : memref<8x8x128xf32, #tpu.memory_space<vmem>>, vector<1x8x128xf32>
    %57 = vector.shape_cast %56 : vector<1x8x128xf32> to vector<8x128xf32>
    %58 = vector.shape_cast %55 : vector<8x128xf32> to vector<1x8x128xf32>
    tpu.vector_store %arg9[%c3, %c0_16, %c0_17], %58 {strides = array<i32>} : memref<8x8x128xf32, #tpu.memory_space<vmem>>, vector<1x8x128xf32>,
    %59 = vector.extract_strided_slice %7 {offsets = [4, 0, 0], sizes = [1, 8, 128], strides = [1, 1, 1]} : vector<8x8x128xf32> to vector<1x8x128xf32>
    %60 = vector.shape_cast %59 : vector<1x8x128xf32> to vector<8x128xf32>
    %61 = vector.extract_strided_slice %7 {offsets = [3, 0, 0], sizes = [1, 8, 128], strides = [1, 1, 1]} : vector<8x8x128xf32> to vector<1x8x128xf32>
    %62 = vector.shape_cast %61 : vector<1x8x128xf32> to vector<8x128xf32>
    %63 = arith.select %26, %60, %62 : vector<8x128xi1>, vector<8x128xf32>
    %c4 = arith.constant 4 : index
    %c0_18 = arith.constant 0 : index
    %c0_19 = arith.constant 0 : index
    %64 = vector.load %arg9[%c4, %c0_18, %c0_19] : memref<8x8x128xf32, #tpu.memory_space<vmem>>, vector<1x8x128xf32>
    %65 = vector.shape_cast %64 : vector<1x8x128xf32> to vector<8x128xf32>
    %66 = vector.shape_cast %63 : vector<8x128xf32> to vector<1x8x128xf32>
    tpu.vector_store %arg9[%c4, %c0_18, %c0_19], %66 {strides = array<i32>} : memref<8x8x128xf32, #tpu.memory_space<vmem>>, vector<1x8x128xf32>,
    %67 = vector.extract_strided_slice %7 {offsets = [5, 0, 0], sizes = [1, 8, 128], strides = [1, 1, 1]} : vector<8x8x128xf32> to vector<1x8x128xf32>
    %68 = vector.shape_cast %67 : vector<1x8x128xf32> to vector<8x128xf32>
    %69 = vector.extract_strided_slice %7 {offsets = [2, 0, 0], sizes = [1, 8, 128], strides = [1, 1, 1]} : vector<8x8x128xf32> to vector<1x8x128xf32>
    %70 = vector.shape_cast %69 : vector<1x8x128xf32> to vector<8x128xf32>
    %71 = arith.select %26, %68, %70 : vector<8x128xi1>, vector<8x128xf32>
    %c5 = arith.constant 5 : index
    %c0_20 = arith.constant 0 : index
    %c0_21 = arith.constant 0 : index
    %72 = vector.load %arg9[%c5, %c0_20, %c0_21] : memref<8x8x128xf32, #tpu.memory_space<vmem>>, vector<1x8x128xf32>
    %73 = vector.shape_cast %72 : vector<1x8x128xf32> to vector<8x128xf32>
    %74 = vector.shape_cast %71 : vector<8x128xf32> to vector<1x8x128xf32>
    tpu.vector_store %arg9[%c5, %c0_20, %c0_21], %74 {strides = array<i32>} : memref<8x8x128xf32, #tpu.memory_space<vmem>>, vector<1x8x128xf32>,
    %75 = vector.extract_strided_slice %7 {offsets = [6, 0, 0], sizes = [1, 8, 128], strides = [1, 1, 1]} : vector<8x8x128xf32> to vector<1x8x128xf32>
    %76 = vector.shape_cast %75 : vector<1x8x128xf32> to vector<8x128xf32>
    %77 = vector.extract_strided_slice %7 {offsets = [1, 0, 0], sizes = [1, 8, 128], strides = [1, 1, 1]} : vector<8x8x128xf32> to vector<1x8x128xf32>
    %78 = vector.shape_cast %77 : vector<1x8x128xf32> to vector<8x128xf32>
    %79 = arith.select %26, %76, %78 : vector<8x128xi1>, vector<8x128xf32>
    %c6 = arith.constant 6 : index
    %c0_22 = arith.constant 0 : index
    %c0_23 = arith.constant 0 : index
    %80 = vector.load %arg9[%c6, %c0_22, %c0_23] : memref<8x8x128xf32, #tpu.memory_space<vmem>>, vector<1x8x128xf32>
    %81 = vector.shape_cast %80 : vector<1x8x128xf32> to vector<8x128xf32>
    %82 = vector.shape_cast %79 : vector<8x128xf32> to vector<1x8x128xf32>
    tpu.vector_store %arg9[%c6, %c0_22, %c0_23], %82 {strides = array<i32>} : memref<8x8x128xf32, #tpu.memory_space<vmem>>, vector<1x8x128xf32>,
    %83 = vector.extract_strided_slice %7 {offsets = [7, 0, 0], sizes = [1, 8, 128], strides = [1, 1, 1]} : vector<8x8x128xf32> to vector<1x8x128xf32>
    %84 = vector.shape_cast %83 : vector<1x8x128xf32> to vector<8x128xf32>
    %85 = vector.extract_strided_slice %7 {offsets = [0, 0, 0], sizes = [1, 8, 128], strides = [1, 1, 1]} : vector<8x8x128xf32> to vector<1x8x128xf32>
    %86 = vector.shape_cast %85 : vector<1x8x128xf32> to vector<8x128xf32>
    %87 = arith.select %26, %84, %86 : vector<8x128xi1>, vector<8x128xf32>
    %c7 = arith.constant 7 : index
    %c0_24 = arith.constant 0 : index
    %c0_25 = arith.constant 0 : index
    %88 = vector.load %arg9[%c7, %c0_24, %c0_25] : memref<8x8x128xf32, #tpu.memory_space<vmem>>, vector<1x8x128xf32>
    %89 = vector.shape_cast %88 : vector<1x8x128xf32> to vector<8x128xf32>
    %90 = vector.shape_cast %87 : vector<8x128xf32> to vector<1x8x128xf32>
    tpu.vector_store %arg9[%c7, %c0_24, %c0_25], %90 {strides = array<i32>} : memref<8x8x128xf32, #tpu.memory_space<vmem>>, vector<1x8x128xf32>,
    %c0_26 = arith.constant 0 : index
    %c0_27 = arith.constant 0 : index
    %91 = vector.load %arg3[%c0_26, %c0_27] : memref<32x128xbf16, #tpu.memory_space<vmem>>, vector<32x128xbf16>
    %cst_28 = arith.constant 0.000000e+00 : f32
    %92 = vector.broadcast %cst_28 : f32 to vector<8x32xf32>
    %cst_29 = arith.constant 0.000000e+00 : f32
    %93 = vector.broadcast %cst_29 : f32 to vector<8x32xf32>
    %c0_i32_30 = arith.constant 0 : i32
    %c7_i32 = arith.constant 7 : i32
    %94 = arith.subi %c7_i32, %c0_i32_30 : i32
    %95 = arith.index_cast %c0_i32_30 : i32 to index
    %c0_31 = arith.constant 0 : index
    %c0_32 = arith.constant 0 : index
    %96 = vector.load %arg9[%95, %c0_31, %c0_32] : memref<8x8x128xf32, #tpu.memory_space<vmem>>, vector<1x8x128xf32>
    %97 = vector.shape_cast %96 : vector<1x8x128xf32> to vector<8x128xf32>
    %98 = arith.truncf %92 : vector<8x32xf32> to vector<8x32xbf16>
    %cst_33 = arith.constant dense<0.000000e+00> : vector<8x128xf32>
    %99 = tpu.matmul %98, %91, %cst_33 {dimension_numbers = #tpu.dot_dimension_numbers<[1], [0], [0], [1], [0, 0, 1, 1], [], []>} : vector<8x32xbf16>, vector<32x128xbf16>, vector<8x128xf32> -> vector<8x128xf32>
    %100 = arith.addf %97, %99 : vector<8x128xf32>
    %101 = vector.extract_strided_slice %100 {offsets = [0, 0], sizes = [8, 64], strides = [1, 1]} : vector<8x128xf32> to vector<8x64xf32>
    %102 = arith.negf %101 : vector<8x64xf32>
    %103 = math.exp %102 : vector<8x64xf32>
    %cst_34 = arith.constant 1.000000e+00 : f32
    %104 = vector.broadcast %cst_34 : f32 to vector<8x64xf32>
    %105 = arith.addf %104, %103 : vector<8x64xf32>
    %106 = arith.divf %104, %105 : vector<8x64xf32>
    %107 = vector.extract_strided_slice %106 {offsets = [0, 0], sizes = [8, 32], strides = [1, 1]} : vector<8x64xf32> to vector<8x32xf32>
    %108 = vector.extract_strided_slice %106 {offsets = [0, 32], sizes = [8, 32], strides = [1, 1]} : vector<8x64xf32> to vector<8x32xf32>
    %109 = vector.extract_strided_slice %100 {offsets = [0, 64], sizes = [8, 32], strides = [1, 1]} : vector<8x128xf32> to vector<8x32xf32>
    %110 = math.tanh %109 : vector<8x32xf32>
    %111 = vector.extract_strided_slice %100 {offsets = [0, 96], sizes = [8, 32], strides = [1, 1]} : vector<8x128xf32> to vector<8x32xf32>
    %112 = arith.negf %111 : vector<8x32xf32>
    %113 = math.exp %112 : vector<8x32xf32>
    %cst_35 = arith.constant 1.000000e+00 : f32
    %114 = vector.broadcast %cst_35 : f32 to vector<8x32xf32>
    %115 = arith.addf %114, %113 : vector<8x32xf32>
    %116 = arith.divf %114, %115 : vector<8x32xf32>
    %117 = arith.mulf %108, %93 : vector<8x32xf32>
    %118 = arith.mulf %107, %110 : vector<8x32xf32>
    %119 = arith.addf %117, %118 : vector<8x32xf32>
    %120 = math.tanh %119 : vector<8x32xf32>
    %121 = arith.mulf %116, %120 : vector<8x32xf32>
    %122 = vector.extract_strided_slice %121 {offsets = [0, 0], sizes = [8, 16], strides = [1, 1]} : vector<8x32xf32> to vector<8x16xf32>
    %123 = arith.index_cast %c0_i32_30 : i32 to index
    %c0_36 = arith.constant 0 : index
    %c0_37 = arith.constant 0 : index
    %124 = vector.load %arg10[%123, %c0_36, %c0_37] : memref<8x8x32xf32, #tpu.memory_space<vmem>>, vector<1x8x16xf32>
    %125 = vector.shape_cast %124 : vector<1x8x16xf32> to vector<8x16xf32>
    %126 = vector.shape_cast %122 : vector<8x16xf32> to vector<1x8x16xf32>
    tpu.vector_store %arg10[%123, %c0_36, %c0_37], %126 {strides = array<i32>} : memref<8x8x32xf32, #tpu.memory_space<vmem>>, vector<1x8x16xf32>,
    %127 = vector.extract_strided_slice %121 {offsets = [0, 16], sizes = [8, 16], strides = [1, 1]} : vector<8x32xf32> to vector<8x16xf32>
    %128 = arith.index_cast %94 : i32 to index
    %c0_38 = arith.constant 0 : index
    %c16 = arith.constant 16 : index
    %129 = vector.load %arg10[%128, %c0_38, %c16] : memref<8x8x32xf32, #tpu.memory_space<vmem>>, vector<1x8x16xf32>
    %130 = vector.shape_cast %129 : vector<1x8x16xf32> to vector<8x16xf32>
    %131 = vector.shape_cast %127 : vector<8x16xf32> to vector<1x8x16xf32>
    tpu.vector_store %arg10[%128, %c0_38, %c16], %131 {strides = array<i32>} : memref<8x8x32xf32, #tpu.memory_space<vmem>>, vector<1x8x16xf32>,
    %c1_i32_39 = arith.constant 1 : i32
    %c7_i32_40 = arith.constant 7 : i32
    %132 = arith.subi %c7_i32_40, %c1_i32_39 : i32
    %133 = arith.index_cast %c1_i32_39 : i32 to index
    %c0_41 = arith.constant 0 : index
    %c0_42 = arith.constant 0 : index
    %134 = vector.load %arg9[%133, %c0_41, %c0_42] : memref<8x8x128xf32, #tpu.memory_space<vmem>>, vector<1x8x128xf32>
    %135 = vector.shape_cast %134 : vector<1x8x128xf32> to vector<8x128xf32>
    %136 = arith.truncf %121 : vector<8x32xf32> to vector<8x32xbf16>
    %cst_43 = arith.constant dense<0.000000e+00> : vector<8x128xf32>
    %137 = tpu.matmul %136, %91, %cst_43 {dimension_numbers = #tpu.dot_dimension_numbers<[1], [0], [0], [1], [0, 0, 1, 1], [], []>} : vector<8x32xbf16>, vector<32x128xbf16>, vector<8x128xf32> -> vector<8x128xf32>
    %138 = arith.addf %135, %137 : vector<8x128xf32>
    %139 = vector.extract_strided_slice %138 {offsets = [0, 0], sizes = [8, 64], strides = [1, 1]} : vector<8x128xf32> to vector<8x64xf32>
    %140 = arith.negf %139 : vector<8x64xf32>
    %141 = math.exp %140 : vector<8x64xf32>
    %cst_44 = arith.constant 1.000000e+00 : f32
    %142 = vector.broadcast %cst_44 : f32 to vector<8x64xf32>
    %143 = arith.addf %142, %141 : vector<8x64xf32>
    %144 = arith.divf %142, %143 : vector<8x64xf32>
    %145 = vector.extract_strided_slice %144 {offsets = [0, 0], sizes = [8, 32], strides = [1, 1]} : vector<8x64xf32> to vector<8x32xf32>
    %146 = vector.extract_strided_slice %144 {offsets = [0, 32], sizes = [8, 32], strides = [1, 1]} : vector<8x64xf32> to vector<8x32xf32>
    %147 = vector.extract_strided_slice %138 {offsets = [0, 64], sizes = [8, 32], strides = [1, 1]} : vector<8x128xf32> to vector<8x32xf32>
    %148 = math.tanh %147 : vector<8x32xf32>
    %149 = vector.extract_strided_slice %138 {offsets = [0, 96], sizes = [8, 32], strides = [1, 1]} : vector<8x128xf32> to vector<8x32xf32>
    %150 = arith.negf %149 : vector<8x32xf32>
    %151 = math.exp %150 : vector<8x32xf32>
    %cst_45 = arith.constant 1.000000e+00 : f32
    %152 = vector.broadcast %cst_45 : f32 to vector<8x32xf32>
    %153 = arith.addf %152, %151 : vector<8x32xf32>
    %154 = arith.divf %152, %153 : vector<8x32xf32>
    %155 = arith.mulf %146, %119 : vector<8x32xf32>
    %156 = arith.mulf %145, %148 : vector<8x32xf32>
    %157 = arith.addf %155, %156 : vector<8x32xf32>
    %158 = math.tanh %157 : vector<8x32xf32>
    %159 = arith.mulf %154, %158 : vector<8x32xf32>
    %160 = vector.extract_strided_slice %159 {offsets = [0, 0], sizes = [8, 16], strides = [1, 1]} : vector<8x32xf32> to vector<8x16xf32>
    %161 = arith.index_cast %c1_i32_39 : i32 to index
    %c0_46 = arith.constant 0 : index
    %c0_47 = arith.constant 0 : index
    %162 = vector.load %arg10[%161, %c0_46, %c0_47] : memref<8x8x32xf32, #tpu.memory_space<vmem>>, vector<1x8x16xf32>
    %163 = vector.shape_cast %162 : vector<1x8x16xf32> to vector<8x16xf32>
    %164 = vector.shape_cast %160 : vector<8x16xf32> to vector<1x8x16xf32>
    tpu.vector_store %arg10[%161, %c0_46, %c0_47], %164 {strides = array<i32>} : memref<8x8x32xf32, #tpu.memory_space<vmem>>, vector<1x8x16xf32>,
    %165 = vector.extract_strided_slice %159 {offsets = [0, 16], sizes = [8, 16], strides = [1, 1]} : vector<8x32xf32> to vector<8x16xf32>
    %166 = arith.index_cast %132 : i32 to index
    %c0_48 = arith.constant 0 : index
    %c16_49 = arith.constant 16 : index
    %167 = vector.load %arg10[%166, %c0_48, %c16_49] : memref<8x8x32xf32, #tpu.memory_space<vmem>>, vector<1x8x16xf32>
    %168 = vector.shape_cast %167 : vector<1x8x16xf32> to vector<8x16xf32>
    %169 = vector.shape_cast %165 : vector<8x16xf32> to vector<1x8x16xf32>
    tpu.vector_store %arg10[%166, %c0_48, %c16_49], %169 {strides = array<i32>} : memref<8x8x32xf32, #tpu.memory_space<vmem>>, vector<1x8x16xf32>,
    %c2_i32 = arith.constant 2 : i32
    %c7_i32_50 = arith.constant 7 : i32
    %170 = arith.subi %c7_i32_50, %c2_i32 : i32
    %171 = arith.index_cast %c2_i32 : i32 to index
    %c0_51 = arith.constant 0 : index
    %c0_52 = arith.constant 0 : index
    %172 = vector.load %arg9[%171, %c0_51, %c0_52] : memref<8x8x128xf32, #tpu.memory_space<vmem>>, vector<1x8x128xf32>
    %173 = vector.shape_cast %172 : vector<1x8x128xf32> to vector<8x128xf32>
    %174 = arith.truncf %159 : vector<8x32xf32> to vector<8x32xbf16>
    %cst_53 = arith.constant dense<0.000000e+00> : vector<8x128xf32>
    %175 = tpu.matmul %174, %91, %cst_53 {dimension_numbers = #tpu.dot_dimension_numbers<[1], [0], [0], [1], [0, 0, 1, 1], [], []>} : vector<8x32xbf16>, vector<32x128xbf16>, vector<8x128xf32> -> vector<8x128xf32>
    %176 = arith.addf %173, %175 : vector<8x128xf32>
    %177 = vector.extract_strided_slice %176 {offsets = [0, 0], sizes = [8, 64], strides = [1, 1]} : vector<8x128xf32> to vector<8x64xf32>
    %178 = arith.negf %177 : vector<8x64xf32>
    %179 = math.exp %178 : vector<8x64xf32>
    %cst_54 = arith.constant 1.000000e+00 : f32
    %180 = vector.broadcast %cst_54 : f32 to vector<8x64xf32>
    %181 = arith.addf %180, %179 : vector<8x64xf32>
    %182 = arith.divf %180, %181 : vector<8x64xf32>
    %183 = vector.extract_strided_slice %182 {offsets = [0, 0], sizes = [8, 32], strides = [1, 1]} : vector<8x64xf32> to vector<8x32xf32>
    %184 = vector.extract_strided_slice %182 {offsets = [0, 32], sizes = [8, 32], strides = [1, 1]} : vector<8x64xf32> to vector<8x32xf32>
    %185 = vector.extract_strided_slice %176 {offsets = [0, 64], sizes = [8, 32], strides = [1, 1]} : vector<8x128xf32> to vector<8x32xf32>
    %186 = math.tanh %185 : vector<8x32xf32>
    %187 = vector.extract_strided_slice %176 {offsets = [0, 96], sizes = [8, 32], strides = [1, 1]} : vector<8x128xf32> to vector<8x32xf32>
    %188 = arith.negf %187 : vector<8x32xf32>
    %189 = math.exp %188 : vector<8x32xf32>
    %cst_55 = arith.constant 1.000000e+00 : f32
    %190 = vector.broadcast %cst_55 : f32 to vector<8x32xf32>
    %191 = arith.addf %190, %189 : vector<8x32xf32>
    %192 = arith.divf %190, %191 : vector<8x32xf32>
    %193 = arith.mulf %184, %157 : vector<8x32xf32>
    %194 = arith.mulf %183, %186 : vector<8x32xf32>
    %195 = arith.addf %193, %194 : vector<8x32xf32>
    %196 = math.tanh %195 : vector<8x32xf32>
    %197 = arith.mulf %192, %196 : vector<8x32xf32>
    %198 = vector.extract_strided_slice %197 {offsets = [0, 0], sizes = [8, 16], strides = [1, 1]} : vector<8x32xf32> to vector<8x16xf32>
    %199 = arith.index_cast %c2_i32 : i32 to index
    %c0_56 = arith.constant 0 : index
    %c0_57 = arith.constant 0 : index
    %200 = vector.load %arg10[%199, %c0_56, %c0_57] : memref<8x8x32xf32, #tpu.memory_space<vmem>>, vector<1x8x16xf32>
    %201 = vector.shape_cast %200 : vector<1x8x16xf32> to vector<8x16xf32>
    %202 = vector.shape_cast %198 : vector<8x16xf32> to vector<1x8x16xf32>
    tpu.vector_store %arg10[%199, %c0_56, %c0_57], %202 {strides = array<i32>} : memref<8x8x32xf32, #tpu.memory_space<vmem>>, vector<1x8x16xf32>,
    %203 = vector.extract_strided_slice %197 {offsets = [0, 16], sizes = [8, 16], strides = [1, 1]} : vector<8x32xf32> to vector<8x16xf32>
    %204 = arith.index_cast %170 : i32 to index
    %c0_58 = arith.constant 0 : index
    %c16_59 = arith.constant 16 : index
    %205 = vector.load %arg10[%204, %c0_58, %c16_59] : memref<8x8x32xf32, #tpu.memory_space<vmem>>, vector<1x8x16xf32>
    %206 = vector.shape_cast %205 : vector<1x8x16xf32> to vector<8x16xf32>
    %207 = vector.shape_cast %203 : vector<8x16xf32> to vector<1x8x16xf32>
    tpu.vector_store %arg10[%204, %c0_58, %c16_59], %207 {strides = array<i32>} : memref<8x8x32xf32, #tpu.memory_space<vmem>>, vector<1x8x16xf32>,
    %c3_i32 = arith.constant 3 : i32
    %c7_i32_60 = arith.constant 7 : i32
    %208 = arith.subi %c7_i32_60, %c3_i32 : i32
    %209 = arith.index_cast %c3_i32 : i32 to index
    %c0_61 = arith.constant 0 : index
    %c0_62 = arith.constant 0 : index
    %210 = vector.load %arg9[%209, %c0_61, %c0_62] : memref<8x8x128xf32, #tpu.memory_space<vmem>>, vector<1x8x128xf32>
    %211 = vector.shape_cast %210 : vector<1x8x128xf32> to vector<8x128xf32>
    %212 = arith.truncf %197 : vector<8x32xf32> to vector<8x32xbf16>
    %cst_63 = arith.constant dense<0.000000e+00> : vector<8x128xf32>
    %213 = tpu.matmul %212, %91, %cst_63 {dimension_numbers = #tpu.dot_dimension_numbers<[1], [0], [0], [1], [0, 0, 1, 1], [], []>} : vector<8x32xbf16>, vector<32x128xbf16>, vector<8x128xf32> -> vector<8x128xf32>
    %214 = arith.addf %211, %213 : vector<8x128xf32>
    %215 = vector.extract_strided_slice %214 {offsets = [0, 0], sizes = [8, 64], strides = [1, 1]} : vector<8x128xf32> to vector<8x64xf32>
    %216 = arith.negf %215 : vector<8x64xf32>
    %217 = math.exp %216 : vector<8x64xf32>
    %cst_64 = arith.constant 1.000000e+00 : f32
    %218 = vector.broadcast %cst_64 : f32 to vector<8x64xf32>
    %219 = arith.addf %218, %217 : vector<8x64xf32>
    %220 = arith.divf %218, %219 : vector<8x64xf32>
    %221 = vector.extract_strided_slice %220 {offsets = [0, 0], sizes = [8, 32], strides = [1, 1]} : vector<8x64xf32> to vector<8x32xf32>
    %222 = vector.extract_strided_slice %220 {offsets = [0, 32], sizes = [8, 32], strides = [1, 1]} : vector<8x64xf32> to vector<8x32xf32>
    %223 = vector.extract_strided_slice %214 {offsets = [0, 64], sizes = [8, 32], strides = [1, 1]} : vector<8x128xf32> to vector<8x32xf32>
    %224 = math.tanh %223 : vector<8x32xf32>
    %225 = vector.extract_strided_slice %214 {offsets = [0, 96], sizes = [8, 32], strides = [1, 1]} : vector<8x128xf32> to vector<8x32xf32>
    %226 = arith.negf %225 : vector<8x32xf32>
    %227 = math.exp %226 : vector<8x32xf32>
    %cst_65 = arith.constant 1.000000e+00 : f32
    %228 = vector.broadcast %cst_65 : f32 to vector<8x32xf32>
    %229 = arith.addf %228, %227 : vector<8x32xf32>
    %230 = arith.divf %228, %229 : vector<8x32xf32>
    %231 = arith.mulf %222, %195 : vector<8x32xf32>
    %232 = arith.mulf %221, %224 : vector<8x32xf32>
    %233 = arith.addf %231, %232 : vector<8x32xf32>
    %234 = math.tanh %233 : vector<8x32xf32>
    %235 = arith.mulf %230, %234 : vector<8x32xf32>
    %236 = vector.extract_strided_slice %235 {offsets = [0, 0], sizes = [8, 16], strides = [1, 1]} : vector<8x32xf32> to vector<8x16xf32>
    %237 = arith.index_cast %c3_i32 : i32 to index
    %c0_66 = arith.constant 0 : index
    %c0_67 = arith.constant 0 : index
    %238 = vector.load %arg10[%237, %c0_66, %c0_67] : memref<8x8x32xf32, #tpu.memory_space<vmem>>, vector<1x8x16xf32>
    %239 = vector.shape_cast %238 : vector<1x8x16xf32> to vector<8x16xf32>
    %240 = vector.shape_cast %236 : vector<8x16xf32> to vector<1x8x16xf32>
    tpu.vector_store %arg10[%237, %c0_66, %c0_67], %240 {strides = array<i32>} : memref<8x8x32xf32, #tpu.memory_space<vmem>>, vector<1x8x16xf32>,
    %241 = vector.extract_strided_slice %235 {offsets = [0, 16], sizes = [8, 16], strides = [1, 1]} : vector<8x32xf32> to vector<8x16xf32>
    %242 = arith.index_cast %208 : i32 to index
    %c0_68 = arith.constant 0 : index
    %c16_69 = arith.constant 16 : index
    %243 = vector.load %arg10[%242, %c0_68, %c16_69] : memref<8x8x32xf32, #tpu.memory_space<vmem>>, vector<1x8x16xf32>
    %244 = vector.shape_cast %243 : vector<1x8x16xf32> to vector<8x16xf32>
    %245 = vector.shape_cast %241 : vector<8x16xf32> to vector<1x8x16xf32>
    tpu.vector_store %arg10[%242, %c0_68, %c16_69], %245 {strides = array<i32>} : memref<8x8x32xf32, #tpu.memory_space<vmem>>, vector<1x8x16xf32>,
    %c4_i32 = arith.constant 4 : i32
    %c7_i32_70 = arith.constant 7 : i32
    %246 = arith.subi %c7_i32_70, %c4_i32 : i32
    %247 = arith.index_cast %c4_i32 : i32 to index
    %c0_71 = arith.constant 0 : index
    %c0_72 = arith.constant 0 : index
    %248 = vector.load %arg9[%247, %c0_71, %c0_72] : memref<8x8x128xf32, #tpu.memory_space<vmem>>, vector<1x8x128xf32>
    %249 = vector.shape_cast %248 : vector<1x8x128xf32> to vector<8x128xf32>
    %250 = arith.truncf %235 : vector<8x32xf32> to vector<8x32xbf16>
    %cst_73 = arith.constant dense<0.000000e+00> : vector<8x128xf32>
    %251 = tpu.matmul %250, %91, %cst_73 {dimension_numbers = #tpu.dot_dimension_numbers<[1], [0], [0], [1], [0, 0, 1, 1], [], []>} : vector<8x32xbf16>, vector<32x128xbf16>, vector<8x128xf32> -> vector<8x128xf32>
    %252 = arith.addf %249, %251 : vector<8x128xf32>
    %253 = vector.extract_strided_slice %252 {offsets = [0, 0], sizes = [8, 64], strides = [1, 1]} : vector<8x128xf32> to vector<8x64xf32>
    %254 = arith.negf %253 : vector<8x64xf32>
    %255 = math.exp %254 : vector<8x64xf32>
    %cst_74 = arith.constant 1.000000e+00 : f32
    %256 = vector.broadcast %cst_74 : f32 to vector<8x64xf32>
    %257 = arith.addf %256, %255 : vector<8x64xf32>
    %258 = arith.divf %256, %257 : vector<8x64xf32>
    %259 = vector.extract_strided_slice %258 {offsets = [0, 0], sizes = [8, 32], strides = [1, 1]} : vector<8x64xf32> to vector<8x32xf32>
    %260 = vector.extract_strided_slice %258 {offsets = [0, 32], sizes = [8, 32], strides = [1, 1]} : vector<8x64xf32> to vector<8x32xf32>
    %261 = vector.extract_strided_slice %252 {offsets = [0, 64], sizes = [8, 32], strides = [1, 1]} : vector<8x128xf32> to vector<8x32xf32>
    %262 = math.tanh %261 : vector<8x32xf32>
    %263 = vector.extract_strided_slice %252 {offsets = [0, 96], sizes = [8, 32], strides = [1, 1]} : vector<8x128xf32> to vector<8x32xf32>
    %264 = arith.negf %263 : vector<8x32xf32>
    %265 = math.exp %264 : vector<8x32xf32>
    %cst_75 = arith.constant 1.000000e+00 : f32
    %266 = vector.broadcast %cst_75 : f32 to vector<8x32xf32>
    %267 = arith.addf %266, %265 : vector<8x32xf32>
    %268 = arith.divf %266, %267 : vector<8x32xf32>
    %269 = arith.mulf %260, %233 : vector<8x32xf32>
    %270 = arith.mulf %259, %262 : vector<8x32xf32>
    %271 = arith.addf %269, %270 : vector<8x32xf32>
    %272 = math.tanh %271 : vector<8x32xf32>
    %273 = arith.mulf %268, %272 : vector<8x32xf32>
    %274 = vector.extract_strided_slice %273 {offsets = [0, 0], sizes = [8, 16], strides = [1, 1]} : vector<8x32xf32> to vector<8x16xf32>
    %275 = arith.index_cast %c4_i32 : i32 to index
    %c0_76 = arith.constant 0 : index
    %c0_77 = arith.constant 0 : index
    %276 = vector.load %arg10[%275, %c0_76, %c0_77] : memref<8x8x32xf32, #tpu.memory_space<vmem>>, vector<1x8x16xf32>
    %277 = vector.shape_cast %276 : vector<1x8x16xf32> to vector<8x16xf32>
    %278 = vector.shape_cast %274 : vector<8x16xf32> to vector<1x8x16xf32>
    tpu.vector_store %arg10[%275, %c0_76, %c0_77], %278 {strides = array<i32>} : memref<8x8x32xf32, #tpu.memory_space<vmem>>, vector<1x8x16xf32>,
    %279 = vector.extract_strided_slice %273 {offsets = [0, 16], sizes = [8, 16], strides = [1, 1]} : vector<8x32xf32> to vector<8x16xf32>
    %280 = arith.index_cast %246 : i32 to index
    %c0_78 = arith.constant 0 : index
    %c16_79 = arith.constant 16 : index
    %281 = vector.load %arg10[%280, %c0_78, %c16_79] : memref<8x8x32xf32, #tpu.memory_space<vmem>>, vector<1x8x16xf32>
    %282 = vector.shape_cast %281 : vector<1x8x16xf32> to vector<8x16xf32>
    %283 = vector.shape_cast %279 : vector<8x16xf32> to vector<1x8x16xf32>
    tpu.vector_store %arg10[%280, %c0_78, %c16_79], %283 {strides = array<i32>} : memref<8x8x32xf32, #tpu.memory_space<vmem>>, vector<1x8x16xf32>,
    %c5_i32 = arith.constant 5 : i32
    %c7_i32_80 = arith.constant 7 : i32
    %284 = arith.subi %c7_i32_80, %c5_i32 : i32
    %285 = arith.index_cast %c5_i32 : i32 to index
    %c0_81 = arith.constant 0 : index
    %c0_82 = arith.constant 0 : index
    %286 = vector.load %arg9[%285, %c0_81, %c0_82] : memref<8x8x128xf32, #tpu.memory_space<vmem>>, vector<1x8x128xf32>
    %287 = vector.shape_cast %286 : vector<1x8x128xf32> to vector<8x128xf32>
    %288 = arith.truncf %273 : vector<8x32xf32> to vector<8x32xbf16>
    %cst_83 = arith.constant dense<0.000000e+00> : vector<8x128xf32>
    %289 = tpu.matmul %288, %91, %cst_83 {dimension_numbers = #tpu.dot_dimension_numbers<[1], [0], [0], [1], [0, 0, 1, 1], [], []>} : vector<8x32xbf16>, vector<32x128xbf16>, vector<8x128xf32> -> vector<8x128xf32>
    %290 = arith.addf %287, %289 : vector<8x128xf32>
    %291 = vector.extract_strided_slice %290 {offsets = [0, 0], sizes = [8, 64], strides = [1, 1]} : vector<8x128xf32> to vector<8x64xf32>
    %292 = arith.negf %291 : vector<8x64xf32>
    %293 = math.exp %292 : vector<8x64xf32>
    %cst_84 = arith.constant 1.000000e+00 : f32
    %294 = vector.broadcast %cst_84 : f32 to vector<8x64xf32>
    %295 = arith.addf %294, %293 : vector<8x64xf32>
    %296 = arith.divf %294, %295 : vector<8x64xf32>
    %297 = vector.extract_strided_slice %296 {offsets = [0, 0], sizes = [8, 32], strides = [1, 1]} : vector<8x64xf32> to vector<8x32xf32>
    %298 = vector.extract_strided_slice %296 {offsets = [0, 32], sizes = [8, 32], strides = [1, 1]} : vector<8x64xf32> to vector<8x32xf32>
    %299 = vector.extract_strided_slice %290 {offsets = [0, 64], sizes = [8, 32], strides = [1, 1]} : vector<8x128xf32> to vector<8x32xf32>
    %300 = math.tanh %299 : vector<8x32xf32>
    %301 = vector.extract_strided_slice %290 {offsets = [0, 96], sizes = [8, 32], strides = [1, 1]} : vector<8x128xf32> to vector<8x32xf32>
    %302 = arith.negf %301 : vector<8x32xf32>
    %303 = math.exp %302 : vector<8x32xf32>
    %cst_85 = arith.constant 1.000000e+00 : f32
    %304 = vector.broadcast %cst_85 : f32 to vector<8x32xf32>
    %305 = arith.addf %304, %303 : vector<8x32xf32>
    %306 = arith.divf %304, %305 : vector<8x32xf32>
    %307 = arith.mulf %298, %271 : vector<8x32xf32>
    %308 = arith.mulf %297, %300 : vector<8x32xf32>
    %309 = arith.addf %307, %308 : vector<8x32xf32>
    %310 = math.tanh %309 : vector<8x32xf32>
    %311 = arith.mulf %306, %310 : vector<8x32xf32>
    %312 = vector.extract_strided_slice %311 {offsets = [0, 0], sizes = [8, 16], strides = [1, 1]} : vector<8x32xf32> to vector<8x16xf32>
    %313 = arith.index_cast %c5_i32 : i32 to index
    %c0_86 = arith.constant 0 : index
    %c0_87 = arith.constant 0 : index
    %314 = vector.load %arg10[%313, %c0_86, %c0_87] : memref<8x8x32xf32, #tpu.memory_space<vmem>>, vector<1x8x16xf32>
    %315 = vector.shape_cast %314 : vector<1x8x16xf32> to vector<8x16xf32>
    %316 = vector.shape_cast %312 : vector<8x16xf32> to vector<1x8x16xf32>
    tpu.vector_store %arg10[%313, %c0_86, %c0_87], %316 {strides = array<i32>} : memref<8x8x32xf32, #tpu.memory_space<vmem>>, vector<1x8x16xf32>,
    %317 = vector.extract_strided_slice %311 {offsets = [0, 16], sizes = [8, 16], strides = [1, 1]} : vector<8x32xf32> to vector<8x16xf32>
    %318 = arith.index_cast %284 : i32 to index
    %c0_88 = arith.constant 0 : index
    %c16_89 = arith.constant 16 : index
    %319 = vector.load %arg10[%318, %c0_88, %c16_89] : memref<8x8x32xf32, #tpu.memory_space<vmem>>, vector<1x8x16xf32>
    %320 = vector.shape_cast %319 : vector<1x8x16xf32> to vector<8x16xf32>
    %321 = vector.shape_cast %317 : vector<8x16xf32> to vector<1x8x16xf32>
    tpu.vector_store %arg10[%318, %c0_88, %c16_89], %321 {strides = array<i32>} : memref<8x8x32xf32, #tpu.memory_space<vmem>>, vector<1x8x16xf32>,
    %c6_i32 = arith.constant 6 : i32
    %c7_i32_90 = arith.constant 7 : i32
    %322 = arith.subi %c7_i32_90, %c6_i32 : i32
    %323 = arith.index_cast %c6_i32 : i32 to index
    %c0_91 = arith.constant 0 : index
    %c0_92 = arith.constant 0 : index
    %324 = vector.load %arg9[%323, %c0_91, %c0_92] : memref<8x8x128xf32, #tpu.memory_space<vmem>>, vector<1x8x128xf32>
    %325 = vector.shape_cast %324 : vector<1x8x128xf32> to vector<8x128xf32>
    %326 = arith.truncf %311 : vector<8x32xf32> to vector<8x32xbf16>
    %cst_93 = arith.constant dense<0.000000e+00> : vector<8x128xf32>
    %327 = tpu.matmul %326, %91, %cst_93 {dimension_numbers = #tpu.dot_dimension_numbers<[1], [0], [0], [1], [0, 0, 1, 1], [], []>} : vector<8x32xbf16>, vector<32x128xbf16>, vector<8x128xf32> -> vector<8x128xf32>
    %328 = arith.addf %325, %327 : vector<8x128xf32>
    %329 = vector.extract_strided_slice %328 {offsets = [0, 0], sizes = [8, 64], strides = [1, 1]} : vector<8x128xf32> to vector<8x64xf32>
    %330 = arith.negf %329 : vector<8x64xf32>
    %331 = math.exp %330 : vector<8x64xf32>
    %cst_94 = arith.constant 1.000000e+00 : f32
    %332 = vector.broadcast %cst_94 : f32 to vector<8x64xf32>
    %333 = arith.addf %332, %331 : vector<8x64xf32>
    %334 = arith.divf %332, %333 : vector<8x64xf32>
    %335 = vector.extract_strided_slice %334 {offsets = [0, 0], sizes = [8, 32], strides = [1, 1]} : vector<8x64xf32> to vector<8x32xf32>
    %336 = vector.extract_strided_slice %334 {offsets = [0, 32], sizes = [8, 32], strides = [1, 1]} : vector<8x64xf32> to vector<8x32xf32>
    %337 = vector.extract_strided_slice %328 {offsets = [0, 64], sizes = [8, 32], strides = [1, 1]} : vector<8x128xf32> to vector<8x32xf32>
    %338 = math.tanh %337 : vector<8x32xf32>
    %339 = vector.extract_strided_slice %328 {offsets = [0, 96], sizes = [8, 32], strides = [1, 1]} : vector<8x128xf32> to vector<8x32xf32>
    %340 = arith.negf %339 : vector<8x32xf32>
    %341 = math.exp %340 : vector<8x32xf32>
    %cst_95 = arith.constant 1.000000e+00 : f32
    %342 = vector.broadcast %cst_95 : f32 to vector<8x32xf32>
    %343 = arith.addf %342, %341 : vector<8x32xf32>
    %344 = arith.divf %342, %343 : vector<8x32xf32>
    %345 = arith.mulf %336, %309 : vector<8x32xf32>
    %346 = arith.mulf %335, %338 : vector<8x32xf32>
    %347 = arith.addf %345, %346 : vector<8x32xf32>
    %348 = math.tanh %347 : vector<8x32xf32>
    %349 = arith.mulf %344, %348 : vector<8x32xf32>
    %350 = vector.extract_strided_slice %349 {offsets = [0, 0], sizes = [8, 16], strides = [1, 1]} : vector<8x32xf32> to vector<8x16xf32>
    %351 = arith.index_cast %c6_i32 : i32 to index
    %c0_96 = arith.constant 0 : index
    %c0_97 = arith.constant 0 : index
    %352 = vector.load %arg10[%351, %c0_96, %c0_97] : memref<8x8x32xf32, #tpu.memory_space<vmem>>, vector<1x8x16xf32>
    %353 = vector.shape_cast %352 : vector<1x8x16xf32> to vector<8x16xf32>
    %354 = vector.shape_cast %350 : vector<8x16xf32> to vector<1x8x16xf32>
    tpu.vector_store %arg10[%351, %c0_96, %c0_97], %354 {strides = array<i32>} : memref<8x8x32xf32, #tpu.memory_space<vmem>>, vector<1x8x16xf32>,
    %355 = vector.extract_strided_slice %349 {offsets = [0, 16], sizes = [8, 16], strides = [1, 1]} : vector<8x32xf32> to vector<8x16xf32>
    %356 = arith.index_cast %322 : i32 to index
    %c0_98 = arith.constant 0 : index
    %c16_99 = arith.constant 16 : index
    %357 = vector.load %arg10[%356, %c0_98, %c16_99] : memref<8x8x32xf32, #tpu.memory_space<vmem>>, vector<1x8x16xf32>
    %358 = vector.shape_cast %357 : vector<1x8x16xf32> to vector<8x16xf32>
    %359 = vector.shape_cast %355 : vector<8x16xf32> to vector<1x8x16xf32>
    tpu.vector_store %arg10[%356, %c0_98, %c16_99], %359 {strides = array<i32>} : memref<8x8x32xf32, #tpu.memory_space<vmem>>, vector<1x8x16xf32>,
    %c7_i32_100 = arith.constant 7 : i32
    %c7_i32_101 = arith.constant 7 : i32
    %360 = arith.subi %c7_i32_101, %c7_i32_100 : i32
    %361 = arith.index_cast %c7_i32_100 : i32 to index
    %c0_102 = arith.constant 0 : index
    %c0_103 = arith.constant 0 : index
    %362 = vector.load %arg9[%361, %c0_102, %c0_103] : memref<8x8x128xf32, #tpu.memory_space<vmem>>, vector<1x8x128xf32>
    %363 = vector.shape_cast %362 : vector<1x8x128xf32> to vector<8x128xf32>
    %364 = arith.truncf %349 : vector<8x32xf32> to vector<8x32xbf16>
    %cst_104 = arith.constant dense<0.000000e+00> : vector<8x128xf32>
    %365 = tpu.matmul %364, %91, %cst_104 {dimension_numbers = #tpu.dot_dimension_numbers<[1], [0], [0], [1], [0, 0, 1, 1], [], []>} : vector<8x32xbf16>, vector<32x128xbf16>, vector<8x128xf32> -> vector<8x128xf32>
    %366 = arith.addf %363, %365 : vector<8x128xf32>
    %367 = vector.extract_strided_slice %366 {offsets = [0, 0], sizes = [8, 64], strides = [1, 1]} : vector<8x128xf32> to vector<8x64xf32>
    %368 = arith.negf %367 : vector<8x64xf32>
    %369 = math.exp %368 : vector<8x64xf32>
    %cst_105 = arith.constant 1.000000e+00 : f32
    %370 = vector.broadcast %cst_105 : f32 to vector<8x64xf32>
    %371 = arith.addf %370, %369 : vector<8x64xf32>
    %372 = arith.divf %370, %371 : vector<8x64xf32>
    %373 = vector.extract_strided_slice %372 {offsets = [0, 0], sizes = [8, 32], strides = [1, 1]} : vector<8x64xf32> to vector<8x32xf32>
    %374 = vector.extract_strided_slice %372 {offsets = [0, 32], sizes = [8, 32], strides = [1, 1]} : vector<8x64xf32> to vector<8x32xf32>
    %375 = vector.extract_strided_slice %366 {offsets = [0, 64], sizes = [8, 32], strides = [1, 1]} : vector<8x128xf32> to vector<8x32xf32>
    %376 = math.tanh %375 : vector<8x32xf32>
    %377 = vector.extract_strided_slice %366 {offsets = [0, 96], sizes = [8, 32], strides = [1, 1]} : vector<8x128xf32> to vector<8x32xf32>
    %378 = arith.negf %377 : vector<8x32xf32>
    %379 = math.exp %378 : vector<8x32xf32>
    %cst_106 = arith.constant 1.000000e+00 : f32
    %380 = vector.broadcast %cst_106 : f32 to vector<8x32xf32>
    %381 = arith.addf %380, %379 : vector<8x32xf32>
    %382 = arith.divf %380, %381 : vector<8x32xf32>
    %383 = arith.mulf %374, %347 : vector<8x32xf32>
    %384 = arith.mulf %373, %376 : vector<8x32xf32>
    %385 = arith.addf %383, %384 : vector<8x32xf32>
    %386 = math.tanh %385 : vector<8x32xf32>
    %387 = arith.mulf %382, %386 : vector<8x32xf32>
    %388 = vector.extract_strided_slice %387 {offsets = [0, 0], sizes = [8, 16], strides = [1, 1]} : vector<8x32xf32> to vector<8x16xf32>
    %389 = arith.index_cast %c7_i32_100 : i32 to index
    %c0_107 = arith.constant 0 : index
    %c0_108 = arith.constant 0 : index
    %390 = vector.load %arg10[%389, %c0_107, %c0_108] : memref<8x8x32xf32, #tpu.memory_space<vmem>>, vector<1x8x16xf32>
    %391 = vector.shape_cast %390 : vector<1x8x16xf32> to vector<8x16xf32>
    %392 = vector.shape_cast %388 : vector<8x16xf32> to vector<1x8x16xf32>
    tpu.vector_store %arg10[%389, %c0_107, %c0_108], %392 {strides = array<i32>} : memref<8x8x32xf32, #tpu.memory_space<vmem>>, vector<1x8x16xf32>,
    %393 = vector.extract_strided_slice %387 {offsets = [0, 16], sizes = [8, 16], strides = [1, 1]} : vector<8x32xf32> to vector<8x16xf32>
    %394 = arith.index_cast %360 : i32 to index
    %c0_109 = arith.constant 0 : index
    %c16_110 = arith.constant 16 : index
    %395 = vector.load %arg10[%394, %c0_109, %c16_110] : memref<8x8x32xf32, #tpu.memory_space<vmem>>, vector<1x8x16xf32>
    %396 = vector.shape_cast %395 : vector<1x8x16xf32> to vector<8x16xf32>
    %397 = vector.shape_cast %393 : vector<8x16xf32> to vector<1x8x16xf32>
    tpu.vector_store %arg10[%394, %c0_109, %c16_110], %397 {strides = array<i32>} : memref<8x8x32xf32, #tpu.memory_space<vmem>>, vector<1x8x16xf32>,
    %c8_i32 = arith.constant 8 : i32
    %c0_111 = arith.constant 0 : index
    %c0_112 = arith.constant 0 : index
    %c0_113 = arith.constant 0 : index
    %398 = vector.load %arg10[%c0_111, %c0_112, %c0_113] : memref<8x8x32xf32, #tpu.memory_space<vmem>>, vector<8x8x32xf32>
    %c0_114 = arith.constant 0 : index
    %c0_115 = arith.constant 0 : index
    %399 = vector.load %arg5[%c0_114, %c0_115] : memref<1x32xf32, #tpu.memory_space<vmem>>, vector<1x32xf32>
    %400 = vector.shape_cast %399 : vector<1x32xf32> to vector<1x1x32xf32>
    %401 = vector.broadcast %400 : vector<1x1x32xf32> to vector<8x8x32xf32>
    %402 = arith.mulf %398, %401 : vector<8x8x32xf32>
    %cst_116 = arith.constant dense<0.000000e+00> : vector<8x8xf32>
    %403 = vector.multi_reduction <add>, %402, %cst_116 [2] : vector<8x8x32xf32> to vector<8x8xf32>
    %404 = vector.shape_cast %403 : vector<8x8xf32> to vector<8x8x1xf32>
    %c0_117 = arith.constant 0 : index
    %c0_118 = arith.constant 0 : index
    %405 = vector.load %arg7[%c0_117, %c0_118] : memref<8x1xf32, #tpu.memory_space<vmem>>, vector<8x1xf32>
    %406 = vector.shape_cast %405 : vector<8x1xf32> to vector<1x8x1xf32>
    %407 = vector.broadcast %406 : vector<1x8x1xf32> to vector<8x8x1xf32>
    %408 = arith.mulf %404, %407 : vector<8x8x1xf32>
    %cst_119 = arith.constant 1.000000e+00 : f32
    %409 = vector.broadcast %cst_119 : f32 to vector<1x8x1xf32>
    %410 = arith.subf %406, %409 : vector<1x8x1xf32>
    %cst_120 = arith.constant 1.000000e+30 : f32
    %411 = vector.broadcast %cst_120 : f32 to vector<1x8x1xf32>
    %412 = arith.mulf %410, %411 : vector<1x8x1xf32>
    %413 = vector.broadcast %412 : vector<1x8x1xf32> to vector<8x8x1xf32>
    %414 = arith.addf %408, %413 : vector<8x8x1xf32>
    %415 = vector.shape_cast %414 : vector<8x8x1xf32> to vector<1x8x8x1xf32>
    %cst_121 = arith.constant dense<0xFF800000> : vector<1xf32>
    %416 = vector.multi_reduction <maximumf>, %415, %cst_121 [1, 2, 3] : vector<1x8x8x1xf32> to vector<1xf32>
    %417 = vector.shape_cast %416 : vector<1xf32> to vector<1x1x1x1xf32>
    %418 = vector.extract %417[0, 0, 0, 0] : f32 from vector<1x1x1x1xf32>
    %419 = vector.broadcast %418 : f32 to vector<8x8x1xf32>
    %420 = arith.subf %404, %419 : vector<8x8x1xf32>
    %421 = math.exp %420 : vector<8x8x1xf32>
    %422 = tpu.iota {dimensions = array<i32: 0>} : vector<8x8x1xi32>
    %c0_122 = arith.constant 0 : index
    %c0_123 = arith.constant 0 : index
    %423 = vector.load %arg6[%c0_122, %c0_123] : memref<8x1xi32, #tpu.memory_space<vmem>>, vector<8x1xi32>
    %424 = vector.shape_cast %423 : vector<8x1xi32> to vector<1x8x1xi32>
    %425 = vector.broadcast %424 : vector<1x8x1xi32> to vector<8x8x1xi32>
    %426 = arith.cmpi slt, %422, %425 : vector<8x8x1xi32>
    %427 = arith.extui %426 : vector<8x8x1xi1> to vector<8x8x1xi32>
    %428 = arith.sitofp %427 : vector<8x8x1xi32> to vector<8x8x1xf32>
    %429 = arith.mulf %421, %428 : vector<8x8x1xf32>
    %430 = vector.broadcast %406 : vector<1x8x1xf32> to vector<8x8x1xf32>
    %431 = arith.mulf %429, %430 : vector<8x8x1xf32>
    %cst_124 = arith.constant dense<0.000000e+00> : vector<8x1xf32>
    %432 = vector.multi_reduction <add>, %431, %cst_124 [0] : vector<8x8x1xf32> to vector<8x1xf32>
    %433 = vector.shape_cast %432 : vector<8x1xf32> to vector<1x8x1xf32>
    %cst_125 = arith.constant 1.000000e-30 : f32
    %434 = vector.broadcast %cst_125 : f32 to vector<1x8x1xf32>
    %435 = arith.maximumf %433, %434 : vector<1x8x1xf32>
    %436 = tpu.reciprocal %435 {approx = true} : vector<1x8x1xf32> -> vector<1x8x1xf32>
    %437 = vector.broadcast %436 : vector<1x8x1xf32> to vector<8x8x1xf32>
    %438 = arith.mulf %431, %437 : vector<8x8x1xf32>
    %439 = vector.broadcast %438 : vector<8x8x1xf32> to vector<8x8x32xf32>
    %440 = arith.mulf %398, %439 : vector<8x8x32xf32>
    %cst_126 = arith.constant dense<0.000000e+00> : vector<8x32xf32>
    %441 = vector.multi_reduction <add>, %440, %cst_126 [0] : vector<8x8x32xf32> to vector<8x32xf32>
    %c0_127 = arith.constant 0 : index
    %c0_128 = arith.constant 0 : index
    %442 = vector.load %arg8[%c0_127, %c0_128] : memref<8x32xf32, #tpu.memory_space<vmem>>, vector<8x32xf32>
    tpu.vector_store %arg8[%c0_127, %c0_128], %441 {strides = array<i32>} : memref<8x32xf32, #tpu.memory_space<vmem>>, vector<8x32xf32>,
    return
  }
  func.func @transform_0(%arg0: i32) -> (i32, i32, i32) {
    %c0_i32 = arith.constant 0 : i32
    %c0_i32_0 = arith.constant 0 : i32
    %c0_i32_1 = arith.constant 0 : i32
    return %c0_i32, %arg0, %c0_i32_0 : i32, i32, i32
  }
  func.func @transform_1(%arg0: i32) -> (i32, i32) {
    %c0_i32 = arith.constant 0 : i32
    %c0_i32_0 = arith.constant 0 : i32
    %c0_i32_1 = arith.constant 0 : i32
    return %c0_i32, %c0_i32_0 : i32, i32
  }
  func.func @transform_2(%arg0: i32) -> (i32, i32) {
    %c0_i32 = arith.constant 0 : i32
    %c0_i32_0 = arith.constant 0 : i32
    %c0_i32_1 = arith.constant 0 : i32
    return %c0_i32, %c0_i32_0 : i32, i32
  }
  func.func @transform_3(%arg0: i32) -> (i32, i32) {
    %c0_i32 = arith.constant 0 : i32
    %c0_i32_0 = arith.constant 0 : i32
    %c0_i32_1 = arith.constant 0 : i32
    return %c0_i32, %c0_i32_0 : i32, i32
  }
  func.func @transform_4(%arg0: i32) -> (i32, i32) {
    %c0_i32 = arith.constant 0 : i32
    %c0_i32_0 = arith.constant 0 : i32
    %c0_i32_1 = arith.constant 0 : i32
    return %c0_i32, %c0_i32_0 : i32, i32
  }
  func.func @transform_5(%arg0: i32) -> (i32, i32) {
    %c0_i32 = arith.constant 0 : i32
    %c0_i32_0 = arith.constant 0 : i32
    return %arg0, %c0_i32 : i32, i32
  }
  func.func @transform_6(%arg0: i32) -> (i32, i32) {
    %c0_i32 = arith.constant 0 : i32
    %c0_i32_0 = arith.constant 0 : i32
    return %arg0, %c0_i32 : i32, i32
  }
  func.func @transform_7(%arg0: i32) -> (i32, i32) {
    %c0_i32 = arith.constant 0 : i32
    %c0_i32_0 = arith.constant 0 : i32
    return %arg0, %c0_i32 : i32, i32
  }
}

</mosaic_0001>

<bundles_post_ra>
// kernel: sent_repre_generator_fwd.3
= control target key start
LH: loop header
LB: loop body
LE: loop exit
PB: predicated region body
PF: predicated region fallthrough
CT: control target
= control target key end

     0   :  { %vm57_vm0 = vcmask 254976   ;;  %v760_v3 = vmov 0   ;;  %vm53_vm1 = vcmask 261120   ;;  %vm103_vm2 = vcmask 1041408   ;;  %s1161_s0 = inlined_call_operand.vmem [shape: f32[8,10,32], index: 0, kind: input, shape index: {}]   ;;  %s1162_s1 = inlined_call_operand.vmem [shape: f32[1,32], index: 1, kind: input, shape index: {}]   ;;  %s1163_s2 = inlined_call_operand.vmem [shape: s32[8,1], index: 2, kind: input, shape index: {}]   ;;  %s1164_s3 = inlined_call_operand.vmem [shape: f32[8,32], index: 3, kind: output, shape index: {}]  }
   0x1   :  { %v785_v0 = vld [vmem:[%s1161_s0 + $0x28] sm:$0x3]  ;;  %v718_v1 = vld [vmem:[%s1162_s1] ss:$0 sm:$0xff]  ;;  %724 = vset.pattern.permute.xlu0 %v760_v3  ;;  %725 = vset.pattern.permute.xlu1 %v760_v3  ;;  %v800_v6 = vld [vmem:[%s1161_s0 + $0x38] sm:$0x3] }
   0x2   :  { %v793_v2 = vld [vmem:[%s1161_s0 + $0x8] sm:$0x3]  ;;  %v42_v4 = vmul.f32 %v718_v1, %v785_v0  ;;  %v805_v7 = vld [vmem:[%s1161_s0 + $0x18] sm:$0x3]  ;;  %v44_v8 = vmul.f32 %v718_v1, %v800_v6  ;;  %v812_v10 = vld [vmem:[%s1161_s0 + $0x10] sm:$0xff]  ;;  %vm386_vm4 = vcmask 130112  }
   0x3   :  { %v38_v5 = vmul.f32 %v718_v1, %v793_v2  ;;  %v40_v9 = vmul.f32 %v718_v1, %v805_v7  ;;  %v817_v11 = vld [vmem:[%s1161_s0] sm:$0xff]  ;;  %v39_v16 = vmul.f32 %v718_v1, %v812_v10  ;;  %v828_v18 = vld [vmem:[%s1161_s0 + $0x30] sm:$0xff]  ;;  %v842_v24 = vld [vmem:[%s1161_s0 + $0x58] sm:$0x3]  ;;  %vm451_vm5 = vcmask 1041409  }
   0x4   :  { %v70_v12 = vsel %vm57_vm0, %v42_v4, 0.0  ;;  %v76_v14 = vsel %vm57_vm0, %v44_v8, 0.0  ;;  %v37_v17 = vmul.f32 %v718_v1, %v817_v11  ;;  %v833_v19 = vld [vmem:[%s1161_s0 + $0x20] sm:$0xff]  ;;  %v43_v22 = vmul.f32 %v718_v1, %v828_v18  ;;  %v847_v25 = vld [vmem:[%s1161_s0 + $0x48] sm:$0x3]  ;;  %v856_v30 = vld [vmem:[%s1161_s0 + $0x50] sm:$0xff] }
   0x5   :  { %v58_v13 = vsel %vm57_vm0, %v38_v5, 0.0  ;;  %71 = vadd.xlane.f32.xlu1 %v70_v12  ;;  %v64_v15 = vsel %vm57_vm0, %v40_v9, 0.0  ;;  %v61_v20 = vsel %vm53_vm1, %v39_v16, 0.0  ;;  %v41_v23 = vmul.f32 %v718_v1, %v833_v19  ;;  %v861_v31 = vld [vmem:[%s1161_s0 + $0x40] sm:$0xff]  ;;  %v870_v36 = vld [vmem:[%s1161_s0 + $0x78] sm:$0x3] }
   0x6   :  { %59 = vadd.xlane.f32.xlu0 %v58_v13  ;;  %v54_v21 = vsel %vm53_vm1, %v37_v17, 0.0  ;;  %v73_v26 = vsel %vm53_vm1, %v43_v22, 0.0  ;;  %v48_v28 = vmul.f32 %v718_v1, %v842_v24  ;;  %v46_v29 = vmul.f32 %v718_v1, %v847_v25  ;;  %v875_v37 = vld [vmem:[%s1161_s0 + $0x68] sm:$0x3]  ;;  %v884_v42 = vld [vmem:[%s1161_s0 + $0x70] sm:$0xff]  ;;  %v889_v43 = vld [vmem:[%s1161_s0 + $0x60] sm:$0xff] }
   0x7   :  { %v67_v27 = vsel %vm53_vm1, %v41_v23, 0.0  ;;  %v47_v34 = vmul.f32 %v718_v1, %v856_v30  ;;  %v45_v35 = vmul.f32 %v718_v1, %v861_v31  ;;  %v52_v40 = vmul.f32 %v718_v1, %v870_v36  ;;  %v185_v50 = vld [vmem:[%s1163_s2] sm:$0xff] }
   0x8   :  { %v88_v32 = vsel %vm57_vm0, %v48_v28, 0.0  ;;  %v82_v33 = vsel %vm57_vm0, %v46_v29, 0.0  ;;  %v50_v41 = vmul.f32 %v718_v1, %v875_v37  ;;  %v51_v46 = vmul.f32 %v718_v1, %v884_v42 }
   0x9   :  { %77 = vadd.xlane.f32.xlu1 %v76_v14  ;;  %v85_v38 = vsel %vm53_vm1, %v47_v34, 0.0  ;;  %v79_v39 = vsel %vm53_vm1, %v45_v35, 0.0  ;;  %v100_v44 = vsel %vm57_vm0, %v52_v40, 0.0  ;;  %v49_v47 = vmul.f32 %v718_v1, %v889_v43 }
   0xa   :  { %65 = vadd.xlane.f32.xlu0 %v64_v15  ;;  %v94_v45 = vsel %vm57_vm0, %v50_v41, 0.0  ;;  %v97_v48 = vsel %vm53_vm1, %v51_v46, 0.0  ;;  %vm453_vm6 = vcmask 1042434   ;;  %vm455_vm7 = vcmask 1043459  }
   0xb   :  { %v91_v49 = vsel %vm53_vm1, %v49_v47, 0.0  ;;  %vm457_vm8 = vcmask 1044484   ;;  %vm459_vm9 = vcmask 1045509   ;;  %vm461_vm10 = vcmask 1046534  }
   0xc   :  { %vm463_vm11 = vcmask 1047559   ;;  %vm466_vm12 = vcmask 80896  }
   0xd   :  { %62 = vadd.xlane.f32.xlu1 %v61_v20 }
   0xe   :  { %55 = vadd.xlane.f32.xlu0 %v54_v21 }
  0x11   :  { %74 = vadd.xlane.f32.xlu1 %v73_v26 }
  0x12   :  { %68 = vadd.xlane.f32.xlu0 %v67_v27  ;;  %v183_v27 = vlaneseq }
  0x14   :  { %v956_v40 = vshrl.u32 %v183_v27, 7 }
  0x15   :  { %89 = vadd.xlane.f32.xlu1 %v88_v32 }
  0x16   :  { %83 = vadd.xlane.f32.xlu0 %v82_v33  ;;  %v195_v46 = vsub.s32 0, %v956_v40 }
  0x19   :  { %86 = vadd.xlane.f32.xlu1 %v85_v38 }
  0x1a   :  { %80 = vadd.xlane.f32.xlu0 %v79_v39 }
  0x1d   :  { %101 = vadd.xlane.f32.xlu1 %v100_v44  ;;  %v958_v44 = vand.u32 127, %v183_v27 }
  0x1e   :  { %95 = vadd.xlane.f32.xlu0 %v94_v45  ;;  %v239_v45 = vsub.s32 4, %v956_v40 }
  0x21   :  { %98 = vadd.xlane.f32.xlu1 %v97_v48 }
  0x22   :  { %92 = vadd.xlane.f32.xlu0 %v91_v49 }
  0x38   :  { %187 = vperm.xlu0 %724, %v185_v50   ;;  %v761_v50 = vmov 0.0  }
  0x92   :  { %v900_v51 = vpop.xlane.xlu1 %71 }
  0x93   :  { %v902_v52 = vpop.xlane.xlu0 %59  ;;  %v107_v1 = vsel %vm103_vm2, %v900_v51, -inf }
  0x94   :  { %v104_v3 = vsel %vm103_vm2, %v902_v52, -inf }
  0x95   :  { %v108_v14 = vmax.f32 %v104_v3, %v107_v1 }
  0x96   :  { %v904_v53 = vpop.xlane.xlu1 %77 }
  0x97   :  { %v906_v54 = vpop.xlane.xlu0 %65  ;;  %v110_v4 = vsel %vm103_vm2, %v904_v53, -inf }
  0x98   :  { %v105_v5 = vsel %vm103_vm2, %v906_v54, -inf }
  0x99   :  { %v111_v15 = vmax.f32 %v105_v5, %v110_v4  ;;  %v1166_v4 = vsub.s32 5, %v956_v40 }
  0x9a   :  { %v908_v55 = vpop.xlane.xlu1 %62 }
  0x9b   :  { %v910_v56 = vpop.xlane.xlu0 %55 }
  0x9e   :  { %v912_v57 = vpop.xlane.xlu1 %74 }
  0x9f   :  { %v914_v58 = vpop.xlane.xlu0 %68  ;;  %v109_v63 = vmax.f32 %v908_v55, %v912_v57 }
  0xa0   :  { %v106_v16 = vmax.f32 %v910_v56, %v914_v58 }
  0xa2   :  { %v916_v59 = vpop.xlane.xlu1 %89 }
  0xa3   :  { %v918_v60 = vpop.xlane.xlu0 %83  ;;  %v116_v8 = vsel %vm103_vm2, %v916_v59, -inf }
  0xa4   :  { %v113_v9 = vsel %vm103_vm2, %v918_v60, -inf  ;;  %v117_v22 = vmax.f32 %v111_v15, %v116_v8  ;;  %v1165_v15 = vsub.s32 6, %v956_v40 }
  0xa5   :  { %v114_v23 = vmax.f32 %v108_v14, %v113_v9 }
  0xa6   :  { %v920_v61 = vpop.xlane.xlu1 %86 }
  0xa7   :  { %v922_v62 = vpop.xlane.xlu0 %80  ;;  %v115_v17 = vmax.f32 %v109_v63, %v920_v61 }
  0xa8   :  { %v112_v26 = vmax.f32 %v106_v16, %v922_v62  ;;  %v1169_v16 = vsub.s32 1, %v956_v40 }
  0xaa   :  { %v938_v12 = vpop.xlane.xlu1 %101 }
  0xab   :  { %v940_v13 = vpop.xlane.xlu0 %95  ;;  %v122_v20 = vsel %vm103_vm2, %v938_v12, -inf }
  0xac   :  { %v119_v21 = vsel %vm103_vm2, %v940_v13, -inf  ;;  %v123_v32 = vmax.f32 %v117_v22, %v122_v20  ;;  %v272_v22 = vsub.s32 7, %v956_v40 }
  0xad   :  { %v120_v33 = vmax.f32 %v114_v23, %v119_v21 }
  0xae   :  { %v950_v28 = vpop.xlane.xlu1 %98 }
  0xaf   :  { %v952_v29 = vpop.xlane.xlu0 %92  ;;  %v121_v34 = vmax.f32 %v115_v17, %v950_v28 }
  0xb0   :  { %v118_v35 = vmax.f32 %v112_v26, %v952_v29  ;;  %v1168_v26 = vsub.s32 2, %v956_v40 }
  0xb1   :  { %v125_v38 = vmax.f32 %v121_v34, %v123_v32  ;;  %v1167_v32 = vsub.s32 3, %v956_v40 }
  0xb2   :  { %v124_v39 = vmax.f32 %v118_v35, %v120_v33 }
  0xb4   :  { %v126_v41 = vmax.f32 %v124_v39, %v125_v38 }
  0xb6   :  { %v127_v47 = vrot.slane %v126_v41, 4 }
  0xb7   :  { %v188_v48 = vpop.permute.xlu0 %187 }
  0xb8   :  { %vm189_vm3 = vcmp.lt.s32.totalorder %v958_v44, %v188_v48  ;;  %v128_v49 = vmax.f32 %v126_v41, %v127_v47 }
  0xb9   :  { %v719_v63 = vsel %vm189_vm3, 1.0, %v761_v50 }
  0xba   :  { %v240_v1 = vrot.slane %v719_v63, %v239_v45  ;;  %v196_v3 = vrot.slane %v719_v63, %v195_v46  ;;  %v129_v5 = vrot.slane %v128_v49, 2  ;;  %v251_v9 = vrot.slane %v719_v63, %v1166_v4 }
  0xbb   :  { %v262_v20 = vrot.slane %v719_v63, %v1165_v15  ;;  %v207_v21 = vrot.slane %v719_v63, %v1169_v16  ;;  %v273_v23 = vrot.slane %v719_v63, %v272_v22  ;;  %v218_v27 = vrot.slane %v719_v63, %v1168_v26 }
  0xbc   :  { %242 = vbcast.lane.b32.xlu0 %v240_v1, 256  ;;  %198 = vbcast.lane.b32.xlu1 %v196_v3, 256  ;;  %v130_v8 = vmax.f32 %v128_v49, %v129_v5  ;;  %v229_v33 = vrot.slane %v719_v63, %v1167_v32 }
  0xbe   :  { %v131_v14 = vrot.slane %v130_v8, 1 }
  0xc0   :  { %253 = vbcast.lane.b32.xlu0 %v251_v9, 256  ;;  %202 = vbcast.lane.b32.xlu1 %v196_v3, 264  ;;  %v132_v17 = vmax.f32 %v130_v8, %v131_v14 }
  0xc2   :  { %720 = vpush %v132_v17 }
  0xc4   :  { %264 = vbcast.lane.b32.xlu0 %v262_v20, 256  ;;  %209 = vbcast.lane.b32.xlu1 %v207_v21, 256 }
  0xc8   :  { %275 = vbcast.lane.b32.xlu0 %v273_v23, 256  ;;  %213 = vbcast.lane.b32.xlu1 %v207_v21, 264 }
  0xcc   :  { %220 = vbcast.lane.b32.xlu1 %v218_v27, 256 }
  0xd0   :  { %224 = vbcast.lane.b32.xlu1 %v218_v27, 264 }
  0xd4   :  { %231 = vbcast.lane.b32.xlu1 %v229_v33, 256 }
  0xd8   :  { %235 = vbcast.lane.b32.xlu1 %v229_v33, 264 }
  0xdc   :  { %246 = vbcast.lane.b32.xlu1 %v240_v1, 264 }
  0xe0   :  { %257 = vbcast.lane.b32.xlu1 %v251_v9, 264 }
  0xe4   :  { %268 = vbcast.lane.b32.xlu1 %v262_v20, 264 }
  0xe8   :  { %279 = vbcast.lane.b32.xlu1 %v273_v23, 264 }
  0xf3   :  { %s721_s2 = spop %720 }
  0xf4   :  { %v985_v34 = vstv %s721_s2 }
  0xf5   :  { %v135_v35 = vsub.f32 %v910_v56, %v985_v34  ;;  %v136_v39 = vsub.f32 %v902_v52, %v985_v34  ;;  %v137_v47 = vsub.f32 %v908_v55, %v985_v34  ;;  %v138_v49 = vsub.f32 %v906_v54, %v985_v34 }
  0xf6   :  { %v139_v63 = vsub.f32 %v914_v58, %v985_v34  ;;  %v140_v5 = vsub.f32 %v900_v51, %v985_v34  ;;  %v141_v58 = vsub.f32 %v912_v57, %v985_v34  ;;  %v143_v20 = vsub.f32 %v922_v62, %v985_v34 }
  0xf7   :  { %v151_v38 = vmul.f32 1.442695, %v135_v35  ;;  %v153_v41 = vmul.f32 1.442695, %v136_v39  ;;  %v155_v48 = vmul.f32 1.442695, %v137_v47  ;;  %v142_v23 = vsub.f32 %v904_v53, %v985_v34 }
  0xf8   :  { %v157_v50 = vmul.f32 1.442695, %v138_v49  ;;  %v159_v52 = vmul.f32 1.442695, %v139_v63  ;;  %v161_v54 = vmul.f32 1.442695, %v140_v5  ;;  %v145_v57 = vsub.f32 %v920_v61, %v985_v34 }
  0xf9   :  { %726 = vpow2.f32 %v151_v38  ;;  %v163_v51 = vmul.f32 1.442695, %v141_v58  ;;  %v167_v35 = vmul.f32 1.442695, %v143_v20  ;;  %v165_v39 = vmul.f32 1.442695, %v142_v23 }
  0xfa   :  { %728 = vpow2.f32 %v153_v41  ;;  %v144_v62 = vsub.f32 %v918_v60, %v985_v34  ;;  %v171_v53 = vmul.f32 1.442695, %v145_v57 }
  0xfb   :  { %730 = vpow2.f32 %v155_v48  ;;  %v147_v48 = vsub.f32 %v952_v29, %v985_v34 }
  0xfc   :  { %732 = vpow2.f32 %v157_v50  ;;  %v169_v61 = vmul.f32 1.442695, %v144_v62  ;;  %v146_v50 = vsub.f32 %v916_v59, %v985_v34 }
  0xfd   :  { %734 = vpow2.f32 %v159_v52  ;;  %v149_v52 = vsub.f32 %v950_v28, %v985_v34  ;;  %v150_v28 = vsub.f32 %v938_v12, %v985_v34 }
  0xfe   :  { %736 = vpow2.f32 %v161_v54  ;;  %v173_v29 = vmul.f32 1.442695, %v146_v50 }
  0xff   :  { %738 = vpow2.f32 %v163_v51  ;;  %v179_v54 = vmul.f32 1.442695, %v149_v52 }
 0x100   :  { %740 = vpow2.f32 %v167_v35 }
 0x101   :  { %742 = vpow2.f32 %v165_v39 }
 0x102   :  { %744 = vpow2.f32 %v171_v53 }
 0x103   :  { %v727_v56 = vpop.eup %726  ;;  %746 = vpow2.f32 %v169_v61 }
 0x104   :  { %v729_v55 = vpop.eup %728 }
 0x105   :  { %v731_v14 = vpop.eup %730 }
 0x106   :  { %v733_v27 = vpop.eup %732 }
 0x107   :  { %v735_v41 = vpop.eup %734 }
 0x108   :  { %v737_v63 = vpop.eup %736 }
 0x109   :  { %v739_v59 = vpop.eup %738 }
 0x10a   :  { %v741_v20 = vpop.eup %740 }
 0x10b   :  { %v743_v51 = vpop.eup %742 }
 0x10c   :  { %v745_v35 = vpop.eup %744 }
 0x10d   :  { %v747_v57 = vpop.eup %746 }
 0x12e   :  { %v199_v1 = vpop.permute.xlu1 %198  ;;  %v243_v60 = vpop.permute.xlu0 %242 }
 0x12f   :  { %v997_v3 = vmul.f32 %v727_v56, %v199_v1  ;;  %v175_v1 = vmul.f32 1.442695, %v147_v48 }
 0x131   :  { %330 = vperm.xlu0 %724, %v997_v3   ;;  %748 = vpow2.f32 %v175_v1 }
 0x132   :  { %v203_v8 = vpop.permute.xlu1 %202  ;;  %750 = vpow2.f32 %v173_v29 }
 0x133   :  { %v1002_v9 = vmul.f32 %v729_v55, %v203_v8  ;;  %v148_v55 = vsub.f32 %v940_v13, %v985_v34  ;;  %v1040_v13 = vmul.f32 %v741_v20, %v243_v60  ;;  %752 = vpow2.f32 %v179_v54 }
 0x135   :  { %333 = vperm.xlu1 %725, %v1002_v9  }
 0x136   :  { %v210_v17 = vpop.permute.xlu1 %209 }
 0x137   :  { %v1009_v21 = vmul.f32 %v731_v14, %v210_v17  ;;  %v254_v14 = vpop.permute.xlu0 %253  ;;  %v177_v17 = vmul.f32 1.442695, %v148_v55 }
 0x138   :  { %v1046_v34 = vmul.f32 %v745_v35, %v254_v14  ;;  %v381_v35 = vadd.s32 4294967288, %v958_v44 }
 0x139   :  { %336 = vperm.xlu0 %724, %v1009_v21   ;;  %754 = vpow2.f32 %v177_v17 }
 0x13a   :  { %v214_v33 = vpop.permute.xlu1 %213 }
 0x13b   :  { %v1016_v38 = vmul.f32 %v733_v27, %v214_v33  ;;  %v181_v33 = vmul.f32 1.442695, %v150_v28  ;;  %v265_v39 = vpop.permute.xlu0 %264 }
 0x13d   :  { %339 = vperm.xlu1 %725, %v1016_v38   ;;  %756 = vpow2.f32 %v181_v33 }
 0x13e   :  { %v221_v47 = vpop.permute.xlu1 %220 }
 0x13f   :  { %v1023_v49 = vmul.f32 %v735_v41, %v221_v47  ;;  %v749_v41 = vpop.eup %748  ;;  %v276_v50 = vpop.permute.xlu0 %275 }
 0x140   :  { %v751_v47 = vpop.eup %750  ;;  %v1052_v48 = vmul.f32 %v749_v41, %v265_v39  ;;  %v379_v41 = vsub.s32 %v958_v44, %v956_v40 }
 0x141   :  { %342 = vperm.xlu0 %724, %v1023_v49  }
 0x142   :  { %v225_v56 = vpop.permute.xlu1 %224 }
 0x143   :  { %v1030_v5 = vmul.f32 %v737_v63, %v225_v56  ;;  %v753_v63 = vpop.eup %752 }
 0x144   :  { %v755_v60 = vpop.eup %754  ;;  %v1058_v1 = vmul.f32 %v753_v63, %v276_v50 }
 0x145   :  { %345 = vperm.xlu1 %725, %v1030_v5  }
 0x146   :  { %v232_v8 = vpop.permute.xlu1 %231 }
 0x147   :  { %v1035_v58 = vmul.f32 %v739_v59, %v232_v8  ;;  %v757_v29 = vpop.eup %756 }
 0x149   :  { %348 = vperm.xlu0 %724, %v1035_v58  }
 0x14a   :  { %v236_v23 = vpop.permute.xlu1 %235 }
 0x14b   :  { %v1042_v27 = vmul.f32 %v743_v51, %v236_v23 }
 0x14d   :  { %354 = vperm.xlu0 %724, %v1040_v13   ;;  %351 = vperm.xlu1 %725, %v1042_v27  }
 0x14e   :  { %v247_v12 = vpop.permute.xlu1 %246 }
 0x14f   :  { %v1048_v62 = vmul.f32 %v747_v57, %v247_v12  ;;  %v384_v12 = vsub.s32 %v381_v35, %v956_v40 }
 0x151   :  { %360 = vperm.xlu0 %724, %v1046_v34   ;;  %357 = vperm.xlu1 %725, %v1048_v62  }
 0x152   :  { %v258_v53 = vpop.permute.xlu1 %257 }
 0x153   :  { %v1054_v61 = vmul.f32 %v751_v47, %v258_v53 }
 0x155   :  { %366 = vperm.xlu0 %724, %v1052_v48   ;;  %363 = vperm.xlu1 %725, %v1054_v61  }
 0x156   :  { %v269_v56 = vpop.permute.xlu1 %268 }
 0x157   :  { %v1060_v52 = vmul.f32 %v755_v60, %v269_v56 }
 0x159   :  { %372 = vperm.xlu0 %724, %v1058_v1   ;;  %369 = vperm.xlu1 %725, %v1060_v52  }
 0x15a   :  { %v280_v55 = vpop.permute.xlu1 %279 }
 0x15b   :  { %v1064_v59 = vmul.f32 %v757_v29, %v280_v55 }
 0x15d   :  { %375 = vperm.xlu1 %725, %v1064_v59  }
 0x1b0   :  { %v331_v8 = vpop.permute.xlu0 %330 }
 0x1b1   :  { %v380_v4 = vrot.slane %v331_v8, %v379_v41 }
 0x1b4   :  { %v334_v54 = vpop.permute.xlu1 %333 }
 0x1b5   :  { %v385_v60 = vrot.slane %v334_v54, %v384_v12 }
 0x1b8   :  { %v337_v14 = vpop.permute.xlu0 %336 }
 0x1b9   :  { %v391_v56 = vrot.slane %v337_v14, %v379_v41 }
 0x1bc   :  { %v340_v17 = vpop.permute.xlu1 %339 }
 0x1bd   :  { %v395_v47 = vrot.slane %v340_v17, %v384_v12 }
 0x1bf   :  { %v396_v32 = vsel %vm386_vm4, %v395_v47, %v391_v56 }
 0x1c0   :  { %v343_v28 = vpop.permute.xlu0 %342 }
 0x1c1   :  { %v400_v55 = vrot.slane %v343_v28, %v379_v41 }
 0x1c4   :  { %v346_v20 = vpop.permute.xlu1 %345 }
 0x1c5   :  { %v404_v53 = vrot.slane %v346_v20, %v384_v12  ;;  %v387_v20 = vsel %vm386_vm4, %v385_v60, %v380_v4 }
 0x1c6   :  { %v452_v28 = vsel %vm451_vm5, %v396_v32, %v387_v20 }
 0x1c7   :  { %v405_v35 = vsel %vm386_vm4, %v404_v53, %v400_v55 }
 0x1c8   :  { %v349_v51 = vpop.permute.xlu0 %348  ;;  %v454_v47 = vsel %vm453_vm6, %v405_v35, %v452_v28 }
 0x1c9   :  { %v409_v26 = vrot.slane %v349_v51, %v379_v41 }
 0x1cc   :  { %v355_v23 = vpop.permute.xlu0 %354  ;;  %v352_v33 = vpop.permute.xlu1 %351 }
 0x1cd   :  { %v413_v29 = vrot.slane %v352_v33, %v384_v12  ;;  %v418_v44 = vrot.slane %v355_v23, %v379_v41 }
 0x1cf   :  { %v414_v54 = vsel %vm386_vm4, %v413_v29, %v409_v26 }
 0x1d0   :  { %v361_v57 = vpop.permute.xlu0 %360  ;;  %v358_v39 = vpop.permute.xlu1 %357  ;;  %v456_v23 = vsel %vm455_vm7, %v414_v54, %v454_v47 }
 0x1d1   :  { %v422_v15 = vrot.slane %v358_v39, %v384_v12  ;;  %v427_v14 = vrot.slane %v361_v57, %v379_v41 }
 0x1d3   :  { %v423_v8 = vsel %vm386_vm4, %v422_v15, %v418_v44 }
 0x1d4   :  { %v367_v50 = vpop.permute.xlu0 %366  ;;  %v364_v63 = vpop.permute.xlu1 %363  ;;  %v458_v26 = vsel %vm457_vm8, %v423_v8, %v456_v23 }
 0x1d5   :  { %v431_v16 = vrot.slane %v364_v63, %v384_v12  ;;  %v436_v39 = vrot.slane %v367_v50, %v379_v41 }
 0x1d7   :  { %v432_v53 = vsel %vm386_vm4, %v431_v16, %v427_v14 }
 0x1d8   :  { %v370_v17 = vpop.permute.xlu1 %369  ;;  %v373_v51 = vpop.permute.xlu0 %372  ;;  %v460_v15 = vsel %vm459_vm9, %v432_v53, %v458_v26  ;;  %v1174_v53 = vsub.s32 6, %v956_v40 }
 0x1d9   :  { %v440_v33 = vrot.slane %v370_v17, %v384_v12  ;;  %v445_v57 = vrot.slane %v373_v51, %v379_v41  ;;  %v1173_v51 = vsub.s32 5, %v956_v40 }
 0x1db   :  { %v441_v4 = vsel %vm386_vm4, %v440_v33, %v436_v39  ;;  %v1170_v33 = vsub.s32 1, %v956_v40 }
 0x1dc   :  { %v376_v63 = vpop.permute.xlu1 %375  ;;  %v462_v60 = vsel %vm461_vm10, %v441_v4, %v460_v15 }
 0x1dd   :  { %v449_v32 = vrot.slane %v376_v63, %v384_v12 }
 0x1df   :  { %v450_v50 = vsel %vm386_vm4, %v449_v32, %v445_v57 }
 0x1e0   :  { %v464_v16 = vsel %vm463_vm11, %v450_v50, %v462_v60 }
 0x1e1   :  { %v467_v56 = vsel %vm466_vm12, %v464_v16, 0.0 }
 0x1e2   :  { %468 = vadd.xlane.f32.xlu0 %v467_v56 }
 0x26f   :  { %v469_v29 = vpop.xlane.xlu0 %468 }
 0x270   :  { %v470_v55 = vmax.f32 %v469_v29, 1e-30 }
 0x272   :  { %758 = vrcp.f32 %v470_v55 }
 0x27c   :  { %v759_v35 = vpop.eup %758 }
 0x27d   :  { %v492_v41 = vrot.slane %v759_v35, %v239_v45  ;;  %v476_v12 = vrot.slane %v759_v35, %v195_v46  ;;  %v504_v20 = vrot.slane %v759_v35, %v272_v22  ;;  %v480_v28 = vrot.slane %v759_v35, %v1170_v33 }
 0x27e   :  { %v496_v47 = vrot.slane %v759_v35, %v1173_v51  ;;  %v500_v23 = vrot.slane %v759_v35, %v1174_v53 }
 0x27f   :  { %v521_v44 = vmul.f32 %v492_v41, %v1040_v13  ;;  %v513_v17 = vmul.f32 %v476_v12, %v997_v3  ;;  %v527_v54 = vmul.f32 %v504_v20, %v1058_v1  ;;  %v514_v14 = vmul.f32 %v476_v12, %v1002_v9 }
 0x280   :  { %v515_v45 = vmul.f32 %v480_v28, %v1009_v21  ;;  %v516_v46 = vmul.f32 %v480_v28, %v1016_v38  ;;  %v1171_v3 = vsub.s32 2, %v956_v40  ;;  %v1172_v9 = vsub.s32 3, %v956_v40 }
 0x281   :  { %571 = vperm.xlu0 %724, %v521_v44   ;;  %531 = vperm.xlu1 %725, %v513_v17   ;;  %v522_v38 = vmul.f32 %v492_v41, %v1048_v62  ;;  %v528_v62 = vmul.f32 %v504_v20, %v1064_v59 }
 0x282   :  { %v484_v13 = vrot.slane %v759_v35, %v1171_v3  ;;  %v488_v8 = vrot.slane %v759_v35, %v1172_v9 }
 0x284   :  { %v517_v22 = vmul.f32 %v484_v13, %v1023_v49  ;;  %v518_v1 = vmul.f32 %v484_v13, %v1030_v5  ;;  %v519_v39 = vmul.f32 %v488_v8, %v1035_v58  ;;  %v520_v21 = vmul.f32 %v488_v8, %v1042_v27 }
 0x285   :  { %601 = vperm.xlu0 %724, %v527_v54   ;;  %536 = vperm.xlu1 %725, %v514_v14   ;;  %v523_v49 = vmul.f32 %v496_v47, %v1046_v34  ;;  %v524_v5 = vmul.f32 %v496_v47, %v1054_v61  ;;  %v525_v58 = vmul.f32 %v500_v23, %v1052_v48 }
 0x286   :  { %v526_v27 = vmul.f32 %v500_v23, %v1060_v52 }
 0x289   :  { %541 = vperm.xlu1 %725, %v515_v45  }
 0x28d   :  { %546 = vperm.xlu1 %725, %v516_v46  }
 0x291   :  { %551 = vperm.xlu1 %725, %v517_v22  }
 0x295   :  { %556 = vperm.xlu1 %725, %v518_v1  }
 0x299   :  { %561 = vperm.xlu1 %725, %v519_v39  }
 0x29d   :  { %566 = vperm.xlu1 %725, %v520_v21  }
 0x2a1   :  { %576 = vperm.xlu1 %725, %v522_v38  }
 0x2a5   :  { %581 = vperm.xlu1 %725, %v523_v49  }
 0x2a9   :  { %586 = vperm.xlu1 %725, %v524_v5  }
 0x2ad   :  { %591 = vperm.xlu1 %725, %v525_v58  }
 0x2b1   :  { %596 = vperm.xlu1 %725, %v526_v27  }
 0x2b5   :  { %606 = vperm.xlu1 %725, %v528_v62  }
 0x300   :  { %v532_v4 = vpop.permute.xlu1 %531  ;;  %v572_v48 = vpop.permute.xlu0 %571 }
 0x301   :  { %v609_v29 = vmul.f32 %v532_v4, %v817_v11 }
 0x304   :  { %v537_v63 = vpop.permute.xlu1 %536  ;;  %v602_v23 = vpop.permute.xlu0 %601 }
 0x305   :  { %v610_v60 = vmul.f32 %v537_v63, %v793_v2 }
 0x307   :  { %v626_v2 = vsel %vm57_vm0, %v610_v60, 0.0 }
 0x308   :  { %v542_v26 = vpop.permute.xlu1 %541 }
 0x309   :  { %v611_v52 = vmul.f32 %v542_v26, %v812_v10 }
 0x30b   :  { %v634_v10 = vsel %vm53_vm1, %v611_v52, 0.0 }
 0x30c   :  { %v547_v34 = vpop.permute.xlu1 %546 }
 0x30d   :  { %v612_v40 = vmul.f32 %v547_v34, %v805_v7  ;;  %v623_v34 = vmul.f32 %v602_v23, %v884_v42 }
 0x30f   :  { %v635_v55 = vsel %vm57_vm0, %v612_v40, 0.0 }
 0x310   :  { %v552_v57 = vpop.permute.xlu1 %551 }
 0x311   :  { %v613_v16 = vmul.f32 %v552_v57, %v833_v19  ;;  %v636_v19 = vadd.f32 %v635_v55, %v634_v10 }
 0x313   :  { %v643_v12 = vsel %vm53_vm1, %v613_v16, 0.0  ;;  %v637_v28 = vrot.slane %v636_v19, 4 }
 0x314   :  { %v557_v32 = vpop.permute.xlu1 %556 }
 0x315   :  { %v614_v50 = vmul.f32 %v557_v32, %v785_v0  ;;  %v617_v0 = vmul.f32 %v572_v48, %v861_v31  ;;  %v638_v39 = vadd.f32 %v637_v28, %v636_v19 }
 0x317   :  { %v644_v41 = vsel %vm57_vm0, %v614_v50, 0.0  ;;  %v661_v31 = vsel %vm53_vm1, %v617_v0, 0.0  ;;  %v639_v58 = vrot.slane %v638_v39, 2 }
 0x318   :  { %v562_v61 = vpop.permute.xlu1 %561  ;;  %v645_v17 = vadd.f32 %v644_v41, %v643_v12 }
 0x319   :  { %v615_v35 = vmul.f32 %v562_v61, %v828_v18  ;;  %v625_v18 = vsel %vm53_vm1, %v609_v29, 0.0 }
 0x31a   :  { %v627_v20 = vadd.f32 %v626_v2, %v625_v18  ;;  %v646_v46 = vrot.slane %v645_v17, 4 }
 0x31c   :  { %v567_v15 = vpop.permute.xlu1 %566  ;;  %v628_v13 = vrot.slane %v627_v20, 4  ;;  %v647_v51 = vadd.f32 %v646_v46, %v645_v17 }
 0x31d   :  { %v616_v59 = vmul.f32 %v567_v15, %v800_v6  ;;  %v640_v15 = vadd.f32 %v639_v58, %v638_v39 }
 0x31e   :  { %v629_v47 = vadd.f32 %v628_v13, %v627_v20  ;;  %v648_v62 = vrot.slane %v647_v51, 2 }
 0x31f   :  { %v653_v6 = vsel %vm57_vm0, %v616_v59, 0.0  ;;  %v641_v29 = vrot.slane %v640_v15, 1 }
 0x320   :  { %v577_v56 = vpop.permute.xlu1 %576  ;;  %v630_v63 = vrot.slane %v629_v47, 2  ;;  %v649_v48 = vadd.f32 %v648_v62, %v647_v51 }
 0x321   :  { %v618_v7 = vmul.f32 %v577_v56, %v847_v25  ;;  %v652_v25 = vsel %vm53_vm1, %v615_v35, 0.0  ;;  %v642_v12 = vadd.f32 %v641_v29, %v640_v15 }
 0x322   :  { %v654_v54 = vadd.f32 %v653_v6, %v652_v25  ;;  %v631_v52 = vadd.f32 %v630_v63, %v629_v47  ;;  %v650_v0 = vrot.slane %v649_v48, 1 }
 0x323   :  { %v662_v11 = vsel %vm57_vm0, %v618_v7, 0.0 }
 0x324   :  { %v582_v44 = vpop.permute.xlu1 %581  ;;  %v663_v14 = vadd.f32 %v662_v11, %v661_v31  ;;  %v655_v22 = vrot.slane %v654_v54, 4  ;;  %v632_v41 = vrot.slane %v631_v52, 1  ;;  %v651_v18 = vadd.f32 %v650_v0, %v649_v48 }
 0x325   :  { %v619_v33 = vmul.f32 %v582_v44, %v856_v30 }
 0x326   :  { %v664_v1 = vrot.slane %v663_v14, 4  ;;  %v656_v49 = vadd.f32 %v655_v22, %v654_v54  ;;  %v633_v17 = vadd.f32 %v632_v41, %v631_v52 }
 0x327   :  { %v670_v9 = vsel %vm53_vm1, %v619_v33, 0.0 }
 0x328   :  { %v587_v45 = vpop.permute.xlu1 %586  ;;  %v665_v30 = vadd.f32 %v664_v1, %v663_v14  ;;  %v657_v26 = vrot.slane %v656_v49, 2  ;;  %v705_v14 = vsel %vm451_vm5, %v642_v12, %v633_v17 }
 0x329   :  { %v620_v3 = vmul.f32 %v587_v45, %v842_v24  ;;  %v706_v45 = vsel %vm453_vm6, %v651_v18, %v705_v14 }
 0x32a   :  { %v666_v57 = vrot.slane %v665_v30, 2  ;;  %v658_v59 = vadd.f32 %v657_v26, %v656_v49 }
 0x32b   :  { %v671_v8 = vsel %vm57_vm0, %v620_v3, 0.0 }
 0x32c   :  { %v672_v21 = vadd.f32 %v671_v8, %v670_v9  ;;  %v592_v38 = vpop.permute.xlu1 %591  ;;  %v667_v56 = vadd.f32 %v666_v57, %v665_v30  ;;  %v659_v2 = vrot.slane %v658_v59, 1 }
 0x32d   :  { %v621_v53 = vmul.f32 %v592_v38, %v889_v43 }
 0x32e   :  { %v673_v5 = vrot.slane %v672_v21, 4  ;;  %v668_v19 = vrot.slane %v667_v56, 1  ;;  %v660_v25 = vadd.f32 %v659_v2, %v658_v59 }
 0x32f   :  { %v679_v32 = vsel %vm53_vm1, %v621_v53, 0.0 }
 0x330   :  { %v674_v24 = vadd.f32 %v673_v5, %v672_v21  ;;  %v597_v27 = vpop.permute.xlu1 %596  ;;  %v669_v54 = vadd.f32 %v668_v19, %v667_v56  ;;  %v707_v3 = vsel %vm455_vm7, %v660_v25, %v706_v45 }
 0x331   :  { %v622_v4 = vmul.f32 %v597_v27, %v875_v37  ;;  %v688_v37 = vsel %vm53_vm1, %v623_v34, 0.0 }
 0x332   :  { %v675_v40 = vrot.slane %v674_v24, 2  ;;  %v708_v22 = vsel %vm457_vm8, %v669_v54, %v707_v3 }
 0x333   :  { %v680_v61 = vsel %vm57_vm0, %v622_v4, 0.0 }
 0x334   :  { %v681_v50 = vadd.f32 %v680_v61, %v679_v32  ;;  %v607_v43 = vpop.permute.xlu1 %606  ;;  %v676_v55 = vadd.f32 %v675_v40, %v674_v24 }
 0x335   :  { %v624_v60 = vmul.f32 %v607_v43, %v870_v36 }
 0x336   :  { %v682_v16 = vrot.slane %v681_v50, 4  ;;  %v677_v36 = vrot.slane %v676_v55, 1 }
 0x337   :  { %v689_v42 = vsel %vm57_vm0, %v624_v60, 0.0 }
 0x338   :  { %v683_v35 = vadd.f32 %v682_v16, %v681_v50  ;;  %v690_v7 = vadd.f32 %v689_v42, %v688_v37  ;;  %v678_v33 = vadd.f32 %v677_v36, %v676_v55 }
 0x33a   :  { %v684_v10 = vrot.slane %v683_v35, 2  ;;  %v691_v6 = vrot.slane %v690_v7, 4  ;;  %v709_v1 = vsel %vm459_vm9, %v678_v33, %v708_v22 }
 0x33c   :  { %v685_v11 = vadd.f32 %v684_v10, %v683_v35  ;;  %v692_v44 = vadd.f32 %v691_v6, %v690_v7 }
 0x33e   :  { %v686_v31 = vrot.slane %v685_v11, 1  ;;  %v693_v20 = vrot.slane %v692_v44, 2 }
 0x340   :  { %v694_v28 = vadd.f32 %v693_v20, %v692_v44  ;;  %v687_v46 = vadd.f32 %v686_v31, %v685_v11 }
 0x342   :  { %v695_v13 = vrot.slane %v694_v28, 1  ;;  %v710_v8 = vsel %vm461_vm10, %v687_v46, %v709_v1 }
 0x344   :  { %v696_v9 = vadd.f32 %v695_v13, %v694_v28 }
 0x346   :  { %v711_v39 = vsel %vm463_vm11, %v696_v9, %v710_v8 }
 0x347   :  { %713 = vst.msk [vmem:[%s1164_s3] sm:$0xff] %vm53_vm1, %v711_v39 }

// kernel: sent_repre_generator_fwd.2
= control target key start
LH: loop header
LB: loop body
LE: loop exit
PB: predicated region body
PF: predicated region fallthrough
CT: control target
= control target key end

     0   :  { %vm70_vm0 = vcmask 130048   ;;  %v1327_v1 = vmov 0.0   ;;  %vm1328_vm1 = vmmov 0   ;;  %v1329_v3 = vmov 0   ;;  %s1331_s14 = smov 32   ;;  %s1754_s1 = inlined_call_operand.vmem [shape: bf16[16,128], index: 1, kind: input, shape index: {}]   ;;  %s1755_s0 = inlined_call_operand.vmem [shape: bf16[8,8,16], index: 0, kind: input, shape index: {}]   ;;  %s1756_s2 = inlined_call_operand.vmem [shape: bf16[32,128], index: 2, kind: input, shape index: {}]   ;;  %s1757_s3 = inlined_call_operand.vmem [shape: f32[1,128], index: 3, kind: input, shape index: {}]   ;;  %s1758_s4 = inlined_call_operand.vmem [shape: f32[1,32], index: 4, kind: input, shape index: {}]   ;;  %s1759_s6 = inlined_call_operand.vmem [shape: f32[8,1], index: 6, kind: input, shape index: {}]   ;;  %s1760_s5 = inlined_call_operand.vmem [shape: s32[8,1], index: 5, kind: input, shape index: {}]   ;;  %s1761_s7 = inlined_call_operand.vmem [shape: f32[8,32], index: 7, kind: output, shape index: {}]  }
   0x1   :  { %v1238_v0 = vld [vmem:[%s1754_s1] sm:$0xff]   ;;  %1165 = vmatprep.subr.bf16.mxu1 %v1327_v1  ;;  %1169 = vmatprep.mubr.msk.bf16.mxu1 %vm1328_vm1, %v1327_v1  ;;  %v1240_v4 = vld [vmem:[%s1755_s0 + $0x8] sm:$0xff]   ;;  %v1242_v6 = vld [vmem:[%s1755_s0 + $0x10] sm:$0xff]   ;;  %v148_v9 = vlaneseq  ;;  %vm203_vm3 = vcmask 261120   ;;  %vm278_vm4 = vcmask 261248   ;;  %vm905_vm5 = vcmask 7168  }
   0x2   :  { %v1239_v2 = vld [vmem:[%s1755_s0] sm:$0xff]   ;;  %1237 = vset.pattern.permute.xlu0 %v1329_v3  ;;  %1236 = vset.pattern.permute.xlu1 %v1329_v3  ;;  %v1398_v7 = vld [vmem:[%s1756_s2 + $0x8] sm:$0xff]   ;;  %v1244_v8 = vld [vmem:[%s1755_s0 + $0x18] sm:$0xff]  }
   0x3   :  { %1155 = vmatprep.subr.bf16.mxu0 %v1238_v0  ;;  %1157 = vmatprep.mubr.msk.bf16.mxu0 %vm70_vm0, %v1239_v2  ;;  %v1388_v5 = vld [vmem:[%s1756_s2] sm:$0xff]   ;;  %v149_v12 = vand.u32 127, %v148_v9 }
   0x4   :  { %1156 = vmatpush3.bf16.msra.mxu0 %v1238_v0  ;;  %1166 = vmatpush3.bf16.msra.mxu1 %v1388_v5  ;;  %v1089_v10 = vld [vmem:[%s1757_s3] ss:$0 sm:$0xff]  ;;  %s1330_s3 = smov 64  }
   0x5   :  { %1181 = vmatprep.subr.bf16.mxu0 %v1327_v1  ;;  %1167 = vmatprep.subr.bf16.mxu1 %v1327_v1  ;;  %v154_v19 = vand.u32 31, %v149_v12 }
   0x7   :  { %1158 = vmatmul.mubr.msk.bf16.vlgmr.msra.gmra.mrb[0].mxu0 %vm70_vm0, %v1240_v4  ;;  %vm1430_vm2 = vcmp.lt.s32.totalorder %v154_v19, 16 }
   0x8   :  { %1161 = vmatprep.mubr.msk.bf16.mxu0 %vm70_vm0, %v1242_v6  ;;  %1182 = vmatpush3.bf16.msra.mxu0 %v1388_v5 }
   0x9   :  { %1183 = vmatprep.subr.bf16.mxu0 %v1327_v1  ;;  %1168 = vmatpush3.bf16.msra.mxu1 %v1398_v7 }
   0xa   :  { %1173 = vmatprep.subr.bf16.mxu1 %v1327_v1 }
   0xc   :  { %1184 = vmatpush3.bf16.msra.mxu0 %v1398_v7  ;;  %1170 = vmatmul.mubr.bf16.vlgmr.msra.gmra.mrb[0].mxu1 %v1329_v3 }
   0xd   :  { %1197 = vmatprep.subr.bf16.mxu0 %v1327_v1  ;;  %1174 = vmatpush3.bf16.msra.mxu1 %v1388_v5 }
   0xe   :  { %1177 = vmatprep.mubr.msk.bf16.mxu1 %vm1328_vm1, %v1327_v1  ;;  %1175 = vmatprep.subr.bf16.mxu1 %v1327_v1 }
   0xf   :  { %1162 = vmatmul.mubr.msk.bf16.gmra.mrb[4].mxu0 %vm70_vm0, %v1244_v8 }
  0x10   :  { %1185 = vmatprep.mubr.msk.bf16.mxu0 %vm1328_vm1, %v1327_v1 }
  0x11   :  { %1176 = vmatpush3.bf16.msra.mxu1 %v1398_v7 }
  0x12   :  { %1189 = vmatprep.subr.bf16.mxu1 %v1327_v1 }
  0xda   :  { %v1159_v11 = vpop.f32.mrb[0].mxu0 }
  0xdb   :  { %v1424_v13 = vadd.f32 %v1159_v11, %v1089_v10  ;;  %v117_v14 = vpop.f32.mrb[1].mxu0 }
  0xdc   :  { %v1160_v15 = vpop.f32.mrb[2].mxu0  ;;  %v1438_v30 = vadd.f32 %v1089_v10, %v117_v14 }
  0xdd   :  { %v1426_v16 = vadd.f32 %v1160_v15, %v1089_v10  ;;  %v120_v17 = vpop.f32.mrb[3].mxu0 }
  0xde   :  { %v1428_v18 = vadd.f32 %v1089_v10, %v120_v17 }
  0xdf   :  { %v241_v20 = vpop.f32.mrb[0].mxu1 }
  0xe0   :  { %v1171_v21 = vpop.f32.mrb[1].mxu1 }
  0xe1   :  { %v244_v24 = vpop.f32.mrb[2].mxu1 }
  0xe2   :  { %v1163_v22 = vpop.f32.mrb[4].mxu0  ;;  %v1172_v27 = vpop.f32.mrb[3].mxu1 }
  0xe3   :  { %v1434_v25 = vadd.f32 %v1163_v22, %v1089_v10  ;;  %v133_v26 = vpop.f32.mrb[5].mxu0 }
  0xe4   :  { %v1436_v28 = vadd.f32 %v1089_v10, %v133_v26  ;;  %v1164_v29 = vpop.f32.mrb[6].mxu0 }
  0xe5   :  { %v1440_v31 = vadd.f32 %v1164_v29, %v1089_v10  ;;  %v136_v32 = vpop.f32.mrb[7].mxu0  ;;  %v165_v33 = vsel %vm1430_vm2, %v1428_v18, %v1434_v25  ;;  %v180_v34 = vsel %vm1430_vm2, %v1434_v25, %v1428_v18 }
  0xe6   :  { %v1450_v35 = vadd.f32 %v1089_v10, %v136_v32  ;;  %v171_v36 = vsel %vm1430_vm2, %v1426_v16, %v1436_v28  ;;  %v174_v37 = vsel %vm1430_vm2, %v1436_v28, %v1426_v16 }
  0xe7   :  { %v163_v38 = vsel %vm1430_vm2, %v1438_v30, %v1440_v31  ;;  %v183_v39 = vsel %vm1430_vm2, %v1440_v31, %v1438_v30 }
  0xe8   :  { %v247_v40 = vadd.f32 %v241_v20, %v163_v38  ;;  %v168_v41 = vsel %vm1430_vm2, %v1424_v13, %v1450_v35  ;;  %v177_v42 = vsel %vm1430_vm2, %v1450_v35, %v1424_v13 }
  0xea   :  { %1245 = vtanh.f32 %v247_v40  ;;  %v1101_v44 = vmul.f32 -1.442695, %v247_v40 }
  0xec   :  { %1247 = vpow2.f32 %v1101_v44 }
  0xf4   :  { %v1246_v43 = vpop.eup %1245 }
  0xf5   :  { %257 = vrot.lane.b32.xlu0 %v1246_v43, %s1330_s3 }
  0xf6   :  { %v1248_v45 = vpop.eup %1247 }
  0xf7   :  { %v251_v46 = vadd.f32 1.0, %v1248_v45 }
  0xf9   :  { %1249 = vrcp.f32 %v251_v46 }
 0x103   :  { %v1250_v47 = vpop.eup %1249 }
 0x104   :  { %v255_v50 = vmul.f32 0.0, %v1250_v47 }
 0x167   :  { %v258_v48 = vpop.permute.xlu0 %257 }
 0x168   :  { %v260_v49 = vmul.f32 %v1250_v47, %v258_v48 }
 0x16a   :  { %262 = vrot.lane.b32.xlu0 %v260_v49, %s1331_s14 }
 0x1dc   :  { %v263_v51 = vpop.permute.xlu0 %262 }
 0x1dd   :  { %v265_v52 = vadd.f32 %v263_v51, %v255_v50 }
 0x1df   :  { %1251 = vtanh.f32 %v265_v52 }
 0x1e9   :  { %v1252_v53 = vpop.eup %1251 }
 0x1ea   :  { %268 = vrot.lane.b32.xlu1 %v1252_v53, %s1330_s3 }
 0x25c   :  { %v269_v54 = vpop.permute.xlu1 %268 }
 0x25d   :  { %v1479_v55 = vmul.f32 %v1250_v47, %v269_v54 }
 0x25f   :  { %v281_v56 = vpack.c.bf16 %v1479_v55, %v1479_v55 }
 0x261   :  { %283 = vrot.lane.b32.xlu1 %v281_v56, %s1331_s14 }
 0x2d3   :  { %v284_v57 = vpop.permute.xlu1 %283 }
 0x2d4   :  { %1178 = vmatmul.mubr.msk.bf16.vlgmr.msra.gmra.mrb[4].mxu1 %vm203_vm3, %v284_v57 }
 0x2d5   :  { %1190 = vmatpush3.bf16.msra.mxu1 %v1388_v5  ;;  %1193 = vmatprep.mubr.msk.bf16.mxu1 %vm1328_vm1, %v1327_v1 }
 0x2d6   :  { %1191 = vmatprep.subr.bf16.mxu1 %v1327_v1 }
 0x2d9   :  { %1192 = vmatpush3.bf16.msra.mxu1 %v1398_v7 }
 0x2da   :  { %1205 = vmatprep.subr.bf16.mxu1 %v1327_v1 }
 0x3a7   :  { %v322_v58 = vpop.f32.mrb[4].mxu1 }
 0x3a8   :  { %v328_v59 = vadd.f32 %v322_v58, %v165_v33  ;;  %v1179_v60 = vpop.f32.mrb[5].mxu1 }
 0x3a9   :  { %v325_v61 = vpop.f32.mrb[6].mxu1 }
 0x3aa   :  { %1253 = vtanh.f32 %v328_v59  ;;  %v1180_v62 = vpop.f32.mrb[7].mxu1  ;;  %v1103_v0 = vmul.f32 -1.442695, %v328_v59 }
 0x3ac   :  { %1255 = vpow2.f32 %v1103_v0 }
 0x3b4   :  { %v1254_v63 = vpop.eup %1253 }
 0x3b5   :  { %338 = vrot.lane.b32.xlu0 %v1254_v63, %s1330_s3 }
 0x3b6   :  { %v1256_v2 = vpop.eup %1255 }
 0x3b7   :  { %v332_v3 = vadd.f32 1.0, %v1256_v2 }
 0x3b9   :  { %1257 = vrcp.f32 %v332_v3 }
 0x3c3   :  { %v1258_v4 = vpop.eup %1257 }
 0x3c4   :  { %v336_v9 = vmul.f32 %v1258_v4, %v265_v52 }
 0x427   :  { %v339_v6 = vpop.permute.xlu0 %338 }
 0x428   :  { %v341_v8 = vmul.f32 %v1258_v4, %v339_v6 }
 0x42a   :  { %343 = vrot.lane.b32.xlu1 %v341_v8, %s1331_s14 }
 0x49c   :  { %v344_v10 = vpop.permute.xlu1 %343 }
 0x49d   :  { %v346_v11 = vadd.f32 %v344_v10, %v336_v9 }
 0x49f   :  { %1259 = vtanh.f32 %v346_v11 }
 0x4a9   :  { %v1260_v12 = vpop.eup %1259 }
 0x4aa   :  { %349 = vrot.lane.b32.xlu0 %v1260_v12, %s1330_s3 }
 0x51c   :  { %v350_v14 = vpop.permute.xlu0 %349 }
 0x51d   :  { %v1494_v15 = vmul.f32 %v1258_v4, %v350_v14 }
 0x51f   :  { %v362_v17 = vpack.c.bf16 %v1494_v15, %v1494_v15 }
 0x521   :  { %364 = vrot.lane.b32.xlu1 %v362_v17, %s1331_s14 }
 0x593   :  { %v365_v19 = vpop.permute.xlu1 %364 }
 0x594   :  { %1186 = vmatmul.mubr.msk.bf16.vlgmr.msra.gmra.mrb[8].mxu0 %vm203_vm3, %v365_v19 }
 0x595   :  { %1198 = vmatpush3.bf16.msra.mxu0 %v1388_v5  ;;  %1201 = vmatprep.mubr.msk.bf16.mxu0 %vm1328_vm1, %v1327_v1 }
 0x596   :  { %1199 = vmatprep.subr.bf16.mxu0 %v1327_v1 }
 0x599   :  { %1200 = vmatpush3.bf16.msra.mxu0 %v1398_v7 }
 0x59a   :  { %1213 = vmatprep.subr.bf16.mxu0 %v1327_v1 }
 0x667   :  { %v403_v20 = vpop.f32.mrb[8].mxu0 }
 0x668   :  { %v409_v21 = vadd.f32 %v403_v20, %v168_v41  ;;  %v1187_v22 = vpop.f32.mrb[9].mxu0 }
 0x669   :  { %v406_v24 = vpop.f32.mrb[10].mxu0 }
 0x66a   :  { %1261 = vtanh.f32 %v409_v21  ;;  %v1188_v26 = vpop.f32.mrb[11].mxu0  ;;  %v1105_v29 = vmul.f32 -1.442695, %v409_v21 }
 0x66c   :  { %1263 = vpow2.f32 %v1105_v29 }
 0x674   :  { %v1262_v27 = vpop.eup %1261 }
 0x675   :  { %419 = vrot.lane.b32.xlu0 %v1262_v27, %s1330_s3 }
 0x676   :  { %v1264_v32 = vpop.eup %1263 }
 0x677   :  { %v413_v33 = vadd.f32 1.0, %v1264_v32 }
 0x679   :  { %1265 = vrcp.f32 %v413_v33 }
 0x683   :  { %v1266_v38 = vpop.eup %1265 }
 0x684   :  { %v417_v44 = vmul.f32 %v1266_v38, %v346_v11 }
 0x6e7   :  { %v420_v40 = vpop.permute.xlu0 %419 }
 0x6e8   :  { %v422_v43 = vmul.f32 %v1266_v38, %v420_v40 }
 0x6ea   :  { %424 = vrot.lane.b32.xlu1 %v422_v43, %s1331_s14 }
 0x75c   :  { %v425_v45 = vpop.permute.xlu1 %424 }
 0x75d   :  { %v427_v41 = vadd.f32 %v425_v45, %v417_v44 }
 0x75f   :  { %1267 = vtanh.f32 %v427_v41 }
 0x769   :  { %v1268_v46 = vpop.eup %1267 }
 0x76a   :  { %430 = vrot.lane.b32.xlu0 %v1268_v46, %s1330_s3 }
 0x7dc   :  { %v431_v47 = vpop.permute.xlu0 %430 }
 0x7dd   :  { %v1514_v48 = vmul.f32 %v1266_v38, %v431_v47 }
 0x7df   :  { %v443_v49 = vpack.c.bf16 %v1514_v48, %v1514_v48 }
 0x7e1   :  { %445 = vrot.lane.b32.xlu1 %v443_v49, %s1331_s14 }
 0x853   :  { %v446_v50 = vpop.permute.xlu1 %445 }
 0x854   :  { %1194 = vmatmul.mubr.msk.bf16.vlgmr.msra.gmra.mrb[8].mxu1 %vm203_vm3, %v446_v50 }
 0x855   :  { %1206 = vmatpush3.bf16.msra.mxu1 %v1388_v5  ;;  %1209 = vmatprep.mubr.msk.bf16.mxu1 %vm1328_vm1, %v1327_v1 }
 0x856   :  { %1207 = vmatprep.subr.bf16.mxu1 %v1327_v1 }
 0x859   :  { %1208 = vmatpush3.bf16.msra.mxu1 %v1398_v7 }
 0x85a   :  { %1221 = vmatprep.subr.bf16.mxu1 %v1327_v1 }
 0x927   :  { %v484_v51 = vpop.f32.mrb[8].mxu1 }
 0x928   :  { %v490_v52 = vadd.f32 %v484_v51, %v171_v36  ;;  %v1195_v53 = vpop.f32.mrb[9].mxu1 }
 0x929   :  { %v487_v54 = vpop.f32.mrb[10].mxu1 }
 0x92a   :  { %1269 = vtanh.f32 %v490_v52  ;;  %v1196_v56 = vpop.f32.mrb[11].mxu1  ;;  %v1107_v58 = vmul.f32 -1.442695, %v490_v52 }
 0x92c   :  { %1271 = vpow2.f32 %v1107_v58 }
 0x934   :  { %v1270_v57 = vpop.eup %1269 }
 0x935   :  { %500 = vrot.lane.b32.xlu0 %v1270_v57, %s1330_s3 }
 0x936   :  { %v1272_v59 = vpop.eup %1271 }
 0x937   :  { %v494_v60 = vadd.f32 1.0, %v1272_v59 }
 0x939   :  { %1273 = vrcp.f32 %v494_v60 }
 0x943   :  { %v1274_v61 = vpop.eup %1273 }
 0x944   :  { %v498_v0 = vmul.f32 %v1274_v61, %v427_v41 }
 0x9a7   :  { %v501_v62 = vpop.permute.xlu0 %500 }
 0x9a8   :  { %v503_v63 = vmul.f32 %v1274_v61, %v501_v62 }
 0x9aa   :  { %505 = vrot.lane.b32.xlu1 %v503_v63, %s1331_s14 }
 0xa1c   :  { %v506_v2 = vpop.permute.xlu1 %505 }
 0xa1d   :  { %v508_v36 = vadd.f32 %v506_v2, %v498_v0 }
 0xa1f   :  { %1275 = vtanh.f32 %v508_v36 }
 0xa29   :  { %v1276_v3 = vpop.eup %1275 }
 0xa2a   :  { %511 = vrot.lane.b32.xlu0 %v1276_v3, %s1330_s3 }
 0xa9c   :  { %v512_v4 = vpop.permute.xlu0 %511 }
 0xa9d   :  { %v1534_v6 = vmul.f32 %v1274_v61, %v512_v4 }
 0xa9f   :  { %v524_v8 = vpack.c.bf16 %v1534_v6, %v1534_v6 }
 0xaa1   :  { %526 = vrot.lane.b32.xlu1 %v524_v8, %s1331_s14 }
 0xb13   :  { %v527_v9 = vpop.permute.xlu1 %526 }
 0xb14   :  { %1202 = vmatmul.mubr.msk.bf16.vlgmr.msra.gmra.mrb[12].mxu0 %vm203_vm3, %v527_v9 }
 0xb15   :  { %1214 = vmatpush3.bf16.msra.mxu0 %v1388_v5  ;;  %1217 = vmatprep.mubr.msk.bf16.mxu0 %vm1328_vm1, %v1327_v1 }
 0xb16   :  { %1215 = vmatprep.subr.bf16.mxu0 %v1327_v1 }
 0xb19   :  { %1216 = vmatpush3.bf16.msra.mxu0 %v1398_v7 }
 0xbe7   :  { %v565_v10 = vpop.f32.mrb[12].mxu0 }
 0xbe8   :  { %v571_v11 = vadd.f32 %v565_v10, %v174_v37  ;;  %v1203_v12 = vpop.f32.mrb[13].mxu0 }
 0xbe9   :  { %v568_v14 = vpop.f32.mrb[14].mxu0 }
 0xbea   :  { %1277 = vtanh.f32 %v571_v11  ;;  %v1204_v17 = vpop.f32.mrb[15].mxu0  ;;  %v1109_v20 = vmul.f32 -1.442695, %v571_v11 }
 0xbec   :  { %1279 = vpow2.f32 %v1109_v20 }
 0xbf4   :  { %v1278_v19 = vpop.eup %1277 }
 0xbf5   :  { %581 = vrot.lane.b32.xlu0 %v1278_v19, %s1330_s3 }
 0xbf6   :  { %v1280_v21 = vpop.eup %1279 }
 0xbf7   :  { %v575_v22 = vadd.f32 1.0, %v1280_v21 }
 0xbf9   :  { %1281 = vrcp.f32 %v575_v22 }
 0xc03   :  { %v1282_v24 = vpop.eup %1281 }
 0xc04   :  { %v579_v29 = vmul.f32 %v1282_v24, %v508_v36 }
 0xc67   :  { %v582_v26 = vpop.permute.xlu0 %581 }
 0xc68   :  { %v584_v27 = vmul.f32 %v1282_v24, %v582_v26 }
 0xc6a   :  { %586 = vrot.lane.b32.xlu1 %v584_v27, %s1331_s14 }
 0xcdc   :  { %v587_v16 = vpop.permute.xlu1 %586 }
 0xcdd   :  { %v589_v28 = vadd.f32 %v587_v16, %v579_v29 }
 0xcdf   :  { %1283 = vtanh.f32 %v589_v28 }
 0xce9   :  { %v1284_v37 = vpop.eup %1283 }
 0xcea   :  { %592 = vrot.lane.b32.xlu0 %v1284_v37, %s1330_s3 }
 0xd5c   :  { %v593_v32 = vpop.permute.xlu0 %592 }
 0xd5d   :  { %v1553_v33 = vmul.f32 %v1282_v24, %v593_v32 }
 0xd5f   :  { %v603_v38 = vpack.c.bf16 %v1553_v33, %v1553_v33 }
 0xd61   :  { %605 = vrot.lane.b32.xlu1 %v603_v38, %s1331_s14 }
 0xdd3   :  { %v606_v40 = vpop.permute.xlu1 %605 }
 0xdd4   :  { %1210 = vmatmul.mubr.msk.bf16.vlgmr.msra.gmra.mrb[12].mxu1 %vm203_vm3, %v606_v40 }
 0xdd5   :  { %1222 = vmatpush3.bf16.msra.mxu1 %v1388_v5  ;;  %1225 = vmatprep.mubr.msk.bf16.mxu1 %vm1328_vm1, %v1327_v1 }
 0xdd6   :  { %1223 = vmatprep.subr.bf16.mxu1 %v1327_v1 }
 0xdd9   :  { %1224 = vmatpush3.bf16.msra.mxu1 %v1398_v7 }
 0xea7   :  { %v644_v43 = vpop.f32.mrb[12].mxu1 }
 0xea8   :  { %v650_v44 = vadd.f32 %v644_v43, %v177_v42  ;;  %v1211_v45 = vpop.f32.mrb[13].mxu1 }
 0xea9   :  { %v647_v41 = vpop.f32.mrb[14].mxu1 }
 0xeaa   :  { %1285 = vtanh.f32 %v650_v44  ;;  %v1212_v46 = vpop.f32.mrb[15].mxu1  ;;  %v1111_v5 = vmul.f32 -1.442695, %v650_v44  ;;  %v1116_v41 = vld [vmem:[%s1758_s4] ss:$0 sm:$0xff] }
 0xeac   :  { %1287 = vpow2.f32 %v1111_v5 }
 0xeb4   :  { %v1286_v47 = vpop.eup %1285 }
 0xeb5   :  { %660 = vrot.lane.b32.xlu0 %v1286_v47, %s1330_s3 }
 0xeb6   :  { %v1288_v49 = vpop.eup %1287 }
 0xeb7   :  { %v654_v50 = vadd.f32 1.0, %v1288_v49 }
 0xeb9   :  { %1289 = vrcp.f32 %v654_v50 }
 0xec3   :  { %v1290_v7 = vpop.eup %1289 }
 0xec4   :  { %v658_v53 = vmul.f32 %v1290_v7, %v589_v28 }
 0xf27   :  { %v661_v51 = vpop.permute.xlu0 %660 }
 0xf28   :  { %v663_v52 = vmul.f32 %v1290_v7, %v661_v51 }
 0xf2a   :  { %665 = vrot.lane.b32.xlu1 %v663_v52, %s1331_s14 }
 0xf9c   :  { %v666_v13 = vpop.permute.xlu1 %665 }
 0xf9d   :  { %v668_v35 = vadd.f32 %v666_v13, %v658_v53 }
 0xf9f   :  { %1291 = vtanh.f32 %v668_v35 }
 0xfa9   :  { %v1292_v42 = vpop.eup %1291 }
 0xfaa   :  { %671 = vrot.lane.b32.xlu0 %v1292_v42, %s1330_s3 }
0x101c   :  { %v672_v54 = vpop.permute.xlu0 %671 }
0x101d   :  { %v1572_v56 = vmul.f32 %v1290_v7, %v672_v54 }
0x101f   :  { %v682_v57 = vpack.c.bf16 %v1572_v56, %v1572_v56 }
0x1021   :  { %684 = vrot.lane.b32.xlu1 %v682_v57, %s1331_s14 }
0x1093   :  { %v685_v58 = vpop.permute.xlu1 %684 }
0x1094   :  { %1218 = vmatmul.mubr.msk.bf16.vlgmr.msra.gmra.mrb[16].mxu0 %vm203_vm3, %v685_v58 }
0x1167   :  { %v723_v59 = vpop.f32.mrb[16].mxu0 }
0x1168   :  { %v729_v60 = vadd.f32 %v723_v59, %v180_v34  ;;  %v1219_v61 = vpop.f32.mrb[17].mxu0 }
0x1169   :  { %v726_v62 = vpop.f32.mrb[18].mxu0 }
0x116a   :  { %1293 = vtanh.f32 %v729_v60  ;;  %v1220_v63 = vpop.f32.mrb[19].mxu0  ;;  %v1113_v2 = vmul.f32 -1.442695, %v729_v60 }
0x116c   :  { %1295 = vpow2.f32 %v1113_v2 }
0x1174   :  { %v1294_v0 = vpop.eup %1293 }
0x1175   :  { %739 = vrot.lane.b32.xlu0 %v1294_v0, %s1330_s3 }
0x1176   :  { %v1296_v36 = vpop.eup %1295 }
0x1177   :  { %v733_v3 = vadd.f32 1.0, %v1296_v36 }
0x1179   :  { %1297 = vrcp.f32 %v733_v3 }
0x1183   :  { %v1298_v4 = vpop.eup %1297 }
0x1184   :  { %v737_v10 = vmul.f32 %v1298_v4, %v668_v35 }
0x11e7   :  { %v740_v8 = vpop.permute.xlu0 %739 }
0x11e8   :  { %v742_v9 = vmul.f32 %v1298_v4, %v740_v8 }
0x11ea   :  { %744 = vrot.lane.b32.xlu1 %v742_v9, %s1331_s14 }
0x125c   :  { %v745_v18 = vpop.permute.xlu1 %744 }
0x125d   :  { %v747_v25 = vadd.f32 %v745_v18, %v737_v10  ;;  %v1672_v10 = vld [vmem:[%s1759_s6] sm:$0xff] }
0x125e   :  { %v1117_v18 = vadd.f32 -1.0, %v1672_v10 }
0x125f   :  { %1299 = vtanh.f32 %v747_v25 }
0x1269   :  { %v1300_v34 = vpop.eup %1299 }
0x126a   :  { %750 = vrot.lane.b32.xlu0 %v1300_v34, %s1330_s3 }
0x12dc   :  { %v751_v11 = vpop.permute.xlu0 %750 }
0x12dd   :  { %v753_v12 = vmul.f32 %v1298_v4, %v751_v11 }
0x12df   :  { %v761_v14 = vpack.c.bf16 %v753_v12, %v753_v12 }
0x12e1   :  { %763 = vrot.lane.b32.xlu1 %v761_v14, %s1331_s14 }
0x1353   :  { %v764_v17 = vpop.permute.xlu1 %763 }
0x1354   :  { %1226 = vmatmul.mubr.msk.bf16.vlgmr.msra.gmra.mrb[16].mxu1 %vm203_vm3, %v764_v17  ;;  %v896_v17 = vmul.f32 1e+30, %v1117_v18 }
0x1427   :  { %v802_v19 = vpop.f32.mrb[16].mxu1 }
0x1428   :  { %v808_v20 = vadd.f32 %v802_v19, %v183_v39  ;;  %v1227_v21 = vpop.f32.mrb[17].mxu1 }
0x1429   :  { %v805_v22 = vpop.f32.mrb[18].mxu1 }
0x142a   :  { %1301 = vtanh.f32 %v808_v20  ;;  %v1228_v24 = vpop.f32.mrb[19].mxu1  ;;  %v1115_v27 = vmul.f32 -1.442695, %v808_v20 }
0x142c   :  { %1303 = vpow2.f32 %v1115_v27 }
0x1434   :  { %v1302_v26 = vpop.eup %1301 }
0x1435   :  { %818 = vrot.lane.b32.xlu0 %v1302_v26, %s1330_s3 }
0x1436   :  { %v1304_v29 = vpop.eup %1303 }
0x1437   :  { %v812_v16 = vadd.f32 1.0, %v1304_v29 }
0x1439   :  { %1305 = vrcp.f32 %v812_v16 }
0x1443   :  { %v1306_v28 = vpop.eup %1305 }
0x1444   :  { %v816_v23 = vmul.f32 %v1306_v28, %v747_v25 }
0x14a7   :  { %v819_v37 = vpop.permute.xlu0 %818 }
0x14a8   :  { %v821_v32 = vmul.f32 %v1306_v28, %v819_v37 }
0x14aa   :  { %823 = vrot.lane.b32.xlu1 %v821_v32, %s1331_s14 }
0x14ae   :  { %273 = vrot.lane.b32.xlu1 %v1479_v55, %s1331_s14 }
0x14b2   :  { %435 = vrot.lane.b32.xlu1 %v1514_v48, %s1331_s14 }
0x14b6   :  { %597 = vrot.lane.b32.xlu1 %v1553_v33, %s1331_s14 }
0x14ba   :  { %755 = vrot.lane.b32.xlu1 %v753_v12, %s1331_s14 }
0x151c   :  { %v824_v30 = vpop.permute.xlu1 %823 }
0x151d   :  { %v826_v31 = vadd.f32 %v824_v30, %v816_v23 }
0x151f   :  { %1307 = vtanh.f32 %v826_v31 }
0x1520   :  { %v274_v39 = vpop.permute.xlu1 %273 }
0x1521   :  { %276 = vst.msk [vmem:[#allocation3] sm:$0xff] %vm70_vm0, %v274_v39 }
0x1522   :  { %279 = vst.msk [vmem:[#allocation3 + $0x38] sm:$0xff] %vm278_vm4, %v274_v39 }
0x1524   :  { %v436_v38 = vpop.permute.xlu1 %435 }
0x1525   :  { %439 = vst.msk [vmem:[#allocation3 + $0x10] sm:$0xff] %vm70_vm0, %v436_v38 }
0x1526   :  { %441 = vst.msk [vmem:[#allocation3 + $0x28] sm:$0xff] %vm278_vm4, %v436_v38 }
0x1528   :  { %v598_v48 = vpop.permute.xlu1 %597 }
0x1529   :  { %v1308_v55 = vpop.eup %1307 }
0x152a   :  { %829 = vrot.lane.b32.xlu0 %v1308_v55, %s1330_s3 }
0x152c   :  { %v756_v44 = vpop.permute.xlu1 %755 }
0x152e   :  { %354 = vrot.lane.b32.xlu0 %v1494_v15, %s1331_s14 }
0x1532   :  { %516 = vrot.lane.b32.xlu0 %v1534_v6, %s1331_s14 }
0x1536   :  { %676 = vrot.lane.b32.xlu0 %v1572_v56, %s1331_s14 }
0x159c   :  { %v830_v33 = vpop.permute.xlu0 %829 }
0x159d   :  { %v832_v40 = vmul.f32 %v1306_v28, %v830_v33 }
0x159f   :  { %834 = vrot.lane.b32.xlu0 %v832_v40, %s1331_s14 }
0x15a0   :  { %v355_v43 = vpop.permute.xlu0 %354 }
0x15a1   :  { %358 = vst.msk [vmem:[#allocation3 + $0x8] sm:$0xff] %vm70_vm0, %v355_v43 }
0x15a2   :  { %360 = vst.msk [vmem:[#allocation3 + $0x30] sm:$0xff] %vm278_vm4, %v355_v43  ;;  %759 = vst.msk [vmem:[#allocation3 + $0x8] sm:$0xff] %vm278_vm4, %v756_v44 }
0x15a3   :  { %758 = vst.msk [vmem:[#allocation3 + $0x30] sm:$0xff] %vm70_vm0, %v756_v44 }
0x15a4   :  { %v517_v15 = vpop.permute.xlu0 %516 }
0x15a5   :  { %520 = vst.msk [vmem:[#allocation3 + $0x18] sm:$0xff] %vm70_vm0, %v517_v15 }
0x15a6   :  { %522 = vst.msk [vmem:[#allocation3 + $0x20] sm:$0xff] %vm278_vm4, %v517_v15  ;;  %601 = vst.msk [vmem:[#allocation3 + $0x18] sm:$0xff] %vm278_vm4, %v598_v48 }
0x15a7   :  { %600 = vst.msk [vmem:[#allocation3 + $0x20] sm:$0xff] %vm70_vm0, %v598_v48 }
0x15a8   :  { %v677_v6 = vpop.permute.xlu0 %676 }
0x15a9   :  { %679 = vst.msk [vmem:[#allocation3 + $0x28] sm:$0xff] %vm70_vm0, %v677_v6  ;;  %v1635_v7 = vld [vmem:[#allocation3 + $0x8] sm:$0xff] }
0x15aa   :  { %680 = vst.msk [vmem:[#allocation3 + $0x10] sm:$0xff] %vm278_vm4, %v677_v6  ;;  %v855_v51 = vmul.f32 %v1116_v41, %v1635_v7  ;;  %v1646_v56 = vld [vmem:[#allocation3 + $0x30] sm:$0xff] }
0x15ab   :  { %v860_v58 = vmul.f32 %v1116_v41, %v1646_v56 }
0x15ac   :  { %v865_v53 = vsel %vm203_vm3, %v855_v51, 0.0 }
0x15ad   :  { %v1624_v45 = vld [vmem:[#allocation3 + $0x18] sm:$0xff]  ;;  %v880_v59 = vsel %vm203_vm3, %v860_v58, 0.0 }
0x15ae   :  { %v857_v46 = vmul.f32 %v1116_v41, %v1624_v45  ;;  %v1642_v35 = vld [vmem:[#allocation3 + $0x20] sm:$0xff] }
0x15af   :  { %v858_v54 = vmul.f32 %v1116_v41, %v1642_v35 }
0x15b0   :  { %v871_v47 = vsel %vm203_vm3, %v857_v46, 0.0  ;;  %v1631_v5 = vld [vmem:[#allocation3 + $0x28] sm:$0xff] }
0x15b1   :  { %872 = vadd.xlane.f32.xlu1 %v871_v47  ;;  %v859_v49 = vmul.f32 %v1116_v41, %v1631_v5  ;;  %v1638_v52 = vld [vmem:[#allocation3 + $0x10] sm:$0xff]  ;;  %v874_v57 = vsel %vm203_vm3, %v858_v54, 0.0 }
0x15b2   :  { %v856_v13 = vmul.f32 %v1116_v41, %v1638_v52 }
0x15b3   :  { %v877_v50 = vsel %vm203_vm3, %v859_v49, 0.0 }
0x15b4   :  { %v868_v42 = vsel %vm203_vm3, %v856_v13, 0.0 }
0x15b5   :  { %878 = vadd.xlane.f32.xlu1 %v877_v50 }
0x15be   :  { %866 = vadd.xlane.f32.xlu0 %v865_v53 }
0x15c2   :  { %869 = vadd.xlane.f32.xlu0 %v868_v42 }
0x15c6   :  { %875 = vadd.xlane.f32.xlu0 %v874_v57 }
0x15ca   :  { %881 = vadd.xlane.f32.xlu0 %v880_v59 }
0x1611   :  { %v835_v60 = vpop.permute.xlu0 %834 }
0x1612   :  { %837 = vst.msk [vmem:[#allocation3 + $0x38] sm:$0xff] %vm70_vm0, %v835_v60 }
0x1613   :  { %838 = vst.msk [vmem:[#allocation3] sm:$0xff] %vm278_vm4, %v835_v60 }
0x1619   :  { %v1655_v62 = vld [vmem:[#allocation3 + $0x38] sm:$0xff] }
0x161a   :  { %v1653_v61 = vld [vmem:[#allocation3] sm:$0xff]  ;;  %v861_v2 = vmul.f32 %v1116_v41, %v1655_v62 }
0x161b   :  { %v854_v63 = vmul.f32 %v1116_v41, %v1653_v61 }
0x161c   :  { %v883_v36 = vsel %vm203_vm3, %v861_v2, 0.0 }
0x161d   :  { %v862_v0 = vsel %vm203_vm3, %v854_v63, 0.0 }
0x161e   :  { %863 = vadd.xlane.f32.xlu1 %v862_v0 }
0x1622   :  { %884 = vadd.xlane.f32.xlu1 %v883_v36 }
0x163e   :  { %v1665_v8 = vpop.xlane.xlu1 %872 }
0x163f   :  { %v890_v19 = vmul.f32 %v1672_v10, %v1665_v8 }
0x1641   :  { %v900_v28 = vadd.f32 %v896_v17, %v890_v19 }
0x1642   :  { %v1675_v25 = vpop.xlane.xlu1 %878 }
0x1643   :  { %v892_v21 = vmul.f32 %v1672_v10, %v1675_v25  ;;  %v909_v40 = vsel %vm905_vm5, %v900_v28, -inf }
0x1645   :  { %v902_v32 = vadd.f32 %v896_v17, %v892_v21 }
0x1647   :  { %v912_v43 = vsel %vm905_vm5, %v902_v32, -inf }
0x164b   :  { %v1661_v3 = vpop.xlane.xlu0 %866 }
0x164c   :  { %v888_v11 = vmul.f32 %v1672_v10, %v1661_v3 }
0x164e   :  { %v898_v26 = vadd.f32 %v896_v17, %v888_v11 }
0x164f   :  { %v1663_v4 = vpop.xlane.xlu0 %869 }
0x1650   :  { %v889_v22 = vmul.f32 %v1672_v10, %v1663_v4  ;;  %v907_v39 = vsel %vm905_vm5, %v898_v26, -inf }
0x1651   :  { %v913_v6 = vmax.f32 %v907_v39, %v912_v43 }
0x1652   :  { %v899_v23 = vadd.f32 %v896_v17, %v889_v22 }
0x1653   :  { %v1667_v9 = vpop.xlane.xlu0 %875 }
0x1654   :  { %v891_v12 = vmul.f32 %v1672_v10, %v1667_v9  ;;  %v908_v44 = vsel %vm905_vm5, %v899_v23, -inf }
0x1656   :  { %v901_v27 = vadd.f32 %v896_v17, %v891_v12 }
0x1657   :  { %v1677_v34 = vpop.xlane.xlu0 %881 }
0x1658   :  { %v893_v14 = vmul.f32 %v1672_v10, %v1677_v34  ;;  %v910_v38 = vsel %vm905_vm5, %v901_v27, -inf }
0x165a   :  { %v903_v29 = vadd.f32 %v896_v17, %v893_v14 }
0x165c   :  { %v914_v55 = vsel %vm905_vm5, %v903_v29, -inf }
0x165d   :  { %v915_v41 = vmax.f32 %v908_v44, %v914_v55 }
0x16ab   :  { %v864_v20 = vpop.xlane.xlu1 %863 }
0x16ac   :  { %v887_v24 = vmul.f32 %v1672_v10, %v864_v20 }
0x16ae   :  { %v897_v16 = vadd.f32 %v896_v17, %v887_v24 }
0x16af   :  { %v885_v37 = vpop.xlane.xlu1 %884 }
0x16b0   :  { %v906_v30 = vsel %vm905_vm5, %v897_v16, -inf  ;;  %v894_v31 = vmul.f32 %v1672_v10, %v885_v37 }
0x16b1   :  { %v911_v33 = vmax.f32 %v906_v30, %v910_v38 }
0x16b2   :  { %v904_v48 = vadd.f32 %v896_v17, %v894_v31 }
0x16b3   :  { %v918_v47 = vmax.f32 %v911_v33, %v913_v6 }
0x16b4   :  { %v916_v15 = vsel %vm905_vm5, %v904_v48, -inf }
0x16b5   :  { %v917_v46 = vmax.f32 %v909_v40, %v916_v15 }
0x16b7   :  { %v919_v49 = vmax.f32 %v915_v41, %v917_v46 }
0x16b9   :  { %v920_v50 = vmax.f32 %v918_v47, %v919_v49 }
0x16bb   :  { %921 = vmax.xlane.f32.xlu0 %v920_v50 }
0x1748   :  { %v922_v51 = vpop.xlane.xlu0 %921 }
0x1749   :  { %v923_v53 = vrot.slane %v922_v51, 4 }
0x174b   :  { %v924_v13 = vmax.f32 %v922_v51, %v923_v53 }
0x174d   :  { %v925_v42 = vrot.slane %v924_v13, 2 }
0x174f   :  { %v926_v54 = vmax.f32 %v924_v13, %v925_v42 }
0x1751   :  { %v927_v57 = vrot.slane %v926_v54, 1 }
0x1753   :  { %v928_v58 = vmax.f32 %v926_v54, %v927_v57 }
0x1755   :  { %1229 = vpush %v928_v58 }
0x1786   :  { %s1230_s6 = spop %1229 }
0x1787   :  { %v930_v59 = vstv %s1230_s6 }
0x1788   :  { %v931_v60 = vsub.f32 %v864_v20, %v930_v59  ;;  %v932_v63 = vsub.f32 %v1661_v3, %v930_v59  ;;  %v933_v0 = vsub.f32 %v1663_v4, %v930_v59  ;;  %v934_v2 = vsub.f32 %v1665_v8, %v930_v59  ;;  %v955_v4 = vld [vmem:[%s1760_s5] sm:$0xff] }
0x1789   :  { %v935_v36 = vsub.f32 %v1667_v9, %v930_v59  ;;  %v936_v18 = vsub.f32 %v1675_v25, %v930_v59  ;;  %v937_v11 = vsub.f32 %v1677_v34, %v930_v59  ;;  %v938_v19 = vsub.f32 %v885_v37, %v930_v59 }
0x178a   :  { %v939_v12 = vmul.f32 1.442695, %v931_v60  ;;  %v941_v14 = vmul.f32 1.442695, %v932_v63  ;;  %v943_v17 = vmul.f32 1.442695, %v933_v0 }
0x178b   :  { %v945_v21 = vmul.f32 1.442695, %v934_v2  ;;  %v947_v22 = vmul.f32 1.442695, %v935_v36  ;;  %v949_v20 = vmul.f32 1.442695, %v936_v18 }
0x178c   :  { %1309 = vpow2.f32 %v939_v12  ;;  %v951_v3 = vmul.f32 1.442695, %v937_v11  ;;  %v953_v8 = vmul.f32 1.442695, %v938_v19  ;;  %vm956_vm6 = vcmp.gt.s32.totalorder %v955_v4, 0 }
0x178d   :  { %1311 = vpow2.f32 %v941_v14  ;;  %vm957_vm7 = vcmp.gt.s32.totalorder %v955_v4, 1  ;;  %vm958_vm8 = vcmp.gt.s32.totalorder %v955_v4, 2  ;;  %vm959_vm9 = vcmp.gt.s32.totalorder %v955_v4, 3 }
0x178e   :  { %1313 = vpow2.f32 %v943_v17  ;;  %v1118_v9 = vsel %vm956_vm6, 1.0, %v1327_v1  ;;  %vm960_vm10 = vcmp.gt.s32.totalorder %v955_v4, 4  ;;  %v1119_v25 = vsel %vm957_vm7, 1.0, %v1327_v1 }
0x178f   :  { %1315 = vpow2.f32 %v945_v21  ;;  %vm961_vm11 = vcmp.gt.s32.totalorder %v955_v4, 5  ;;  %v1120_v24 = vsel %vm958_vm8, 1.0, %v1327_v1  ;;  %v1121_v27 = vsel %vm959_vm9, 1.0, %v1327_v1 }
0x1790   :  { %1317 = vpow2.f32 %v947_v22  ;;  %vm962_vm12 = vcmp.gt.s32.totalorder %v955_v4, 6  ;;  %v1122_v28 = vsel %vm960_vm10, 1.0, %v1327_v1  ;;  %v1123_v23 = vsel %vm961_vm11, 1.0, %v1327_v1 }
0x1791   :  { %1319 = vpow2.f32 %v949_v20  ;;  %vm963_vm13 = vcmp.gt.s32.totalorder %v955_v4, 7  ;;  %v1124_v33 = vsel %vm962_vm12, 1.0, %v1327_v1 }
0x1792   :  { %1321 = vpow2.f32 %v951_v3  ;;  %v1125_v49 = vsel %vm963_vm13, 1.0, %v1327_v1 }
0x1793   :  { %1323 = vpow2.f32 %v953_v8 }
0x1796   :  { %v1310_v34 = vpop.eup %1309 }
0x1797   :  { %v1312_v26 = vpop.eup %1311  ;;  %v980_v29 = vmul.f32 %v1310_v34, %v1118_v9 }
0x1798   :  { %v1314_v16 = vpop.eup %1313  ;;  %v981_v37 = vmul.f32 %v1312_v26, %v1119_v25 }
0x1799   :  { %v1316_v32 = vpop.eup %1315  ;;  %v982_v30 = vmul.f32 %v1314_v16, %v1120_v24  ;;  %v988_v31 = vmul.f32 %v980_v29, %v1672_v10 }
0x179a   :  { %v1318_v39 = vpop.eup %1317  ;;  %v983_v38 = vmul.f32 %v1316_v32, %v1121_v27  ;;  %v989_v55 = vmul.f32 %v981_v37, %v1672_v10 }
0x179b   :  { %v1320_v48 = vpop.eup %1319  ;;  %v984_v40 = vmul.f32 %v1318_v39, %v1122_v28  ;;  %v990_v43 = vmul.f32 %v982_v30, %v1672_v10  ;;  %v996_v44 = vsel %vm905_vm5, %v988_v31, 0.0 }
0x179c   :  { %v1322_v15 = vpop.eup %1321  ;;  %v985_v6 = vmul.f32 %v1320_v48, %v1123_v23  ;;  %v991_v41 = vmul.f32 %v983_v38, %v1672_v10  ;;  %v997_v46 = vsel %vm905_vm5, %v989_v55, 0.0 }
0x179d   :  { %v1324_v47 = vpop.eup %1323  ;;  %v998_v50 = vadd.f32 %v997_v46, %v996_v44  ;;  %v986_v51 = vmul.f32 %v1322_v15, %v1124_v33  ;;  %v992_v53 = vmul.f32 %v984_v40, %v1672_v10  ;;  %v999_v13 = vsel %vm905_vm5, %v990_v43, 0.0 }
0x179e   :  { %v987_v54 = vmul.f32 %v1324_v47, %v1125_v49  ;;  %v993_v57 = vmul.f32 %v985_v6, %v1672_v10  ;;  %v1001_v58 = vsel %vm905_vm5, %v991_v41, 0.0 }
0x179f   :  { %v1000_v42 = vadd.f32 %v999_v13, %v998_v50  ;;  %v994_v60 = vmul.f32 %v986_v51, %v1672_v10  ;;  %v1003_v63 = vsel %vm905_vm5, %v992_v53, 0.0 }
0x17a0   :  { %v995_v1 = vmul.f32 %v987_v54, %v1672_v10  ;;  %v1005_v2 = vsel %vm905_vm5, %v993_v57, 0.0 }
0x17a1   :  { %v1002_v59 = vadd.f32 %v1001_v58, %v1000_v42  ;;  %v1007_v18 = vsel %vm905_vm5, %v994_v60, 0.0 }
0x17a2   :  { %v1009_v12 = vsel %vm905_vm5, %v995_v1, 0.0 }
0x17a3   :  { %v1004_v0 = vadd.f32 %v1003_v63, %v1002_v59 }
0x17a5   :  { %v1006_v36 = vadd.f32 %v1005_v2, %v1004_v0 }
0x17a7   :  { %v1008_v11 = vadd.f32 %v1007_v18, %v1006_v36 }
0x17a9   :  { %v1010_v14 = vadd.f32 %v1009_v12, %v1008_v11 }
0x17ab   :  { %v1011_v17 = vmax.f32 %v1010_v14, 1e-30 }
0x17ad   :  { %1325 = vrcp.f32 %v1011_v17 }
0x17b7   :  { %v1326_v19 = vpop.eup %1325 }
0x17b8   :  { %v1014_v21 = vmul.f32 %v1326_v19, %v989_v55  ;;  %v1013_v22 = vmul.f32 %v1326_v19, %v988_v31  ;;  %v1015_v20 = vmul.f32 %v1326_v19, %v990_v43  ;;  %v1016_v3 = vmul.f32 %v1326_v19, %v991_v41 }
0x17b9   :  { %v1017_v10 = vmul.f32 %v1326_v19, %v992_v53  ;;  %v1018_v4 = vmul.f32 %v1326_v19, %v993_v57  ;;  %v1019_v8 = vmul.f32 %v1326_v19, %v994_v60  ;;  %v1020_v9 = vmul.f32 %v1326_v19, %v995_v1 }
0x17ba   :  { %1028 = vperm.xlu0 %1237, %v1014_v21   ;;  %1023 = vperm.xlu1 %1236, %v1013_v22  }
0x17be   :  { %1033 = vperm.xlu1 %1236, %v1015_v20  }
0x17c2   :  { %1038 = vperm.xlu1 %1236, %v1016_v3  }
0x17c6   :  { %1043 = vperm.xlu1 %1236, %v1017_v10  }
0x17ca   :  { %1048 = vperm.xlu1 %1236, %v1018_v4  }
0x17ce   :  { %1053 = vperm.xlu1 %1236, %v1019_v8  }
0x17d2   :  { %1058 = vperm.xlu1 %1236, %v1020_v9  }
0x1839   :  { %v1024_v25 = vpop.permute.xlu1 %1023  ;;  %v1029_v24 = vpop.permute.xlu0 %1028 }
0x183a   :  { %v1062_v27 = vmul.f32 %v1029_v24, %v1635_v7  ;;  %v1061_v29 = vmul.f32 %v1024_v25, %v1653_v61 }
0x183c   :  { %v1070_v37 = vsel %vm203_vm3, %v1062_v27, 0.0  ;;  %v1069_v32 = vsel %vm203_vm3, %v1061_v29, 0.0 }
0x183d   :  { %v1034_v34 = vpop.permute.xlu1 %1033  ;;  %v1071_v39 = vadd.f32 %v1070_v37, %v1069_v32 }
0x183e   :  { %v1063_v16 = vmul.f32 %v1034_v34, %v1638_v52 }
0x1840   :  { %v1072_v30 = vsel %vm203_vm3, %v1063_v16, 0.0 }
0x1841   :  { %v1039_v26 = vpop.permute.xlu1 %1038  ;;  %v1073_v61 = vadd.f32 %v1072_v30, %v1071_v39 }
0x1842   :  { %v1064_v23 = vmul.f32 %v1039_v26, %v1624_v45 }
0x1844   :  { %v1074_v55 = vsel %vm203_vm3, %v1064_v23, 0.0 }
0x1845   :  { %v1044_v28 = vpop.permute.xlu1 %1043  ;;  %v1075_v48 = vadd.f32 %v1074_v55, %v1073_v61 }
0x1846   :  { %v1065_v31 = vmul.f32 %v1044_v28, %v1642_v35 }
0x1848   :  { %v1076_v52 = vsel %vm203_vm3, %v1065_v31, 0.0 }
0x1849   :  { %v1049_v38 = vpop.permute.xlu1 %1048  ;;  %v1077_v45 = vadd.f32 %v1076_v52, %v1075_v48 }
0x184a   :  { %v1066_v7 = vmul.f32 %v1049_v38, %v1631_v5 }
0x184c   :  { %v1078_v40 = vsel %vm203_vm3, %v1066_v7, 0.0 }
0x184d   :  { %v1054_v33 = vpop.permute.xlu1 %1053  ;;  %v1079_v15 = vadd.f32 %v1078_v40, %v1077_v45 }
0x184e   :  { %v1067_v43 = vmul.f32 %v1054_v33, %v1646_v56 }
0x1850   :  { %v1080_v44 = vsel %vm203_vm3, %v1067_v43, 0.0 }
0x1851   :  { %v1059_v35 = vpop.permute.xlu1 %1058  ;;  %v1081_v41 = vadd.f32 %v1080_v44, %v1079_v15 }
0x1852   :  { %v1068_v6 = vmul.f32 %v1059_v35, %v1655_v62 }
0x1854   :  { %v1082_v46 = vsel %vm203_vm3, %v1068_v6, 0.0 }
0x1855   :  { %v1083_v5 = vadd.f32 %v1082_v46, %v1081_v41 }
0x1857   :  { %1084 = vst.msk [vmem:[%s1761_s7] sm:$0xff] %vm203_vm3, %v1083_v5 }

</bundles_post_ra>
